<compile_context>
chip_gen: v7x
topology: tpu7x:2x2x1
jax: 0.10.0
libtpu: 0.0.40
codegen_flags: <defaults>
</compile_context>

<pallas_src>
import functools

import jax
import jax.numpy as jnp
from jax.experimental import pallas as pl
from jax.experimental.pallas import tpu as pltpu


def _round_up(x, m):
    return ((x + m - 1) // m) * m


def _layer_row_offsets(dims):
    """Row offset of each layer's weight inside the packed weight slab."""
    offs = [0]
    for fin in dims[:-1]:
        offs.append(offs[-1] + _round_up(fin, 16))   # bf16 sublane packing = 16 rows
    return tuple(offs)


def _packed_widths(dims, out_pad):
    n = len(dims) - 1
    return tuple([dims[i + 1] for i in range(n - 1)] + [out_pad])


def pack_params(params):
    """One-time prep: pack 6 (W, b) pairs into one bf16 weight slab + one f32 bias slab.

    Turns 12 tiny parameter inputs (12 DMAs with descriptor overhead + sub-(8,128)
    padding) into 2 lane-/sublane-aligned arrays that stay resident in VMEM.
    """
    dims = (params[0][0].shape[0],) + tuple(w.shape[1] for w, _ in params)
    n = len(params)
    out_pad = _round_up(dims[-1], 128)                 # lane-dense final store
    pack_w = _round_up(max(_packed_widths(dims, out_pad)), 128)
    offs = _layer_row_offsets(dims)
    total_rows = offs[-1]

    w_pack = jnp.zeros((total_rows, pack_w), jnp.bfloat16)
    b_pack = jnp.zeros((n, pack_w), jnp.float32)
    for li, (w, b) in enumerate(params):
        fin, fout = w.shape
        w_pack = w_pack.at[offs[li]:offs[li] + fin, :fout].set(w.astype(jnp.bfloat16))
        b_pack = b_pack.at[li, :fout].set(b.reshape(-1).astype(jnp.float32))
    return dims, w_pack, b_pack


def _make_kernel(dims, out_pad):
    n = len(dims) - 1
    offs = _layer_row_offsets(dims)

    def kernel(x_ref, w_ref, b_ref, o_ref):
        # f32 -> bf16 cast done in-kernel: x is read from HBM exactly once, as f32.
        h = x_ref[...].astype(jnp.bfloat16)
        y = None
        for li in range(n):                               # fully unrolled layer chain
            fin = dims[li]
            fout = out_pad if li == n - 1 else dims[li + 1]
            w = w_ref[offs[li]:offs[li] + fin, :fout]      # static slice of packed slab
            b = b_ref[li:li + 1, :fout]                    # (1, fout) f32 bias row
            # bf16 x bf16 matmul on the MXU, f32 accumulation; bias/ReLU on the VPU.
            y = jnp.dot(h, w, preferred_element_type=jnp.float32) + b
            if li < n - 1:
                h = jnp.maximum(y, 0.0).astype(jnp.bfloat16)
        o_ref[...] = y.astype(o_ref.dtype)                 # final layer stays f32

    return kernel


@functools.partial(jax.jit, static_argnames=("dims", "tile_m"))
def _mlp_forward_jit(x, w_pack, b_pack, *, dims, tile_m):
    B, F = x.shape
    assert F == dims[0]
    out_features = dims[-1]
    out_pad = _round_up(out_features, 128)
    B_pad = _round_up(B, tile_m)
    if B_pad != B:
        x = jnp.pad(x, ((0, B_pad - B), (0, 0)))

    total_rows, pack_w = w_pack.shape
    widths = _packed_widths(dims, out_pad)

    # Explicit VMEM budget (double-buffered x/out tiles, resident packed params,
    # per-layer f32/bf16 temporaries) with 2x headroom, capped at v7x's 64 MiB.
    need = (2 * tile_m * F * 4                    # x tile (f32), double buffered
            + 2 * tile_m * out_pad * 4            # out tile (f32), double buffered
            + 2 * total_rows * pack_w * 2         # packed bf16 weights
            + 2 * 8 * pack_w * 4                  # packed f32 biases
            + tile_m * sum(widths) * 8)           # per-layer activation temporaries
    vmem_limit = int(min(64 * 1024 * 1024, max(16 * 1024 * 1024, 2 * need)))

    out = pl.pallas_call(
        _make_kernel(dims, out_pad),
        out_shape=jax.ShapeDtypeStruct((B_pad, out_pad), jnp.float32),
        grid_spec=pltpu.PrefetchScalarGridSpec(
            num_scalar_prefetch=0,
            grid=(B_pad // tile_m,),
            in_specs=[
                pl.BlockSpec((tile_m, F), lambda i: (i, 0)),      # batch tile of x
                pl.BlockSpec(w_pack.shape, lambda i: (0, 0)),     # resident weight slab
                pl.BlockSpec(b_pack.shape, lambda i: (0, 0)),     # resident bias slab
            ],
            out_specs=pl.BlockSpec((tile_m, out_pad), lambda i: (i, 0)),
        ),
        compiler_params=pltpu.CompilerParams(
            dimension_semantics=("parallel",),
            vmem_limit_bytes=vmem_limit,
        ),
    )(x, w_pack, b_pack)
    return out[:B, :out_features]


def _cores_per_chip():
    try:
        d = jax.devices()[0]
        for attr in ("num_cores", "core_count"):
            v = getattr(d, attr, None)
            if isinstance(v, int) and v > 0:
                return v
    except Exception:
        pass
    return 1


def default_tile_m(batch):
    cores = _cores_per_chip()
    if cores > 1:
        # Give every TensorCore >= 2 grid steps so the x/out pipeline overlaps.
        tm = _round_up(max(16, pl.cdiv(batch, 2 * cores)), 16)
    else:
        # Single-core chips (v5e/v6e): one big tile amortizes per-step overhead.
        tm = _round_up(batch, 16)
    return int(max(16, min(256, tm)))


def mlp_forward(x, packed, *, tile_m=None):
    """x: (B, F) f32.  packed: output of pack_params(params)."""
    dims, w_pack, b_pack = packed
    if tile_m is None:
        tile_m = default_tile_m(x.shape[0])
    tile_m = int(_round_up(tile_m, 16))
    return _mlp_forward_jit(x, w_pack, b_pack, dims=dims, tile_m=tile_m)


def init_params(key, dims):
    """Deterministic init: W ~ N(0,1)/sqrt(fan_in) with shape (in, out), b = 0.01."""
    params = []
    for fan_in, fan_out in zip(dims[:-1], dims[1:]):
        key, sub = jax.random.split(key)
        w = (jax.random.normal(sub, (fan_in, fan_out), dtype=jnp.float32)
             / jnp.sqrt(jnp.float32(fan_in)))
        b = jnp.full((1, fan_out), 0.01, dtype=jnp.float32)
        params.append((w, b))
    return params


def mlp_reference(x, params):
    """Pure-JAX reference mirroring the kernel's bf16-matmul / f32-accumulate math."""
    h = x.astype(jnp.bfloat16)
    y = None
    for i, (w, b) in enumerate(params):
        y = jnp.dot(h, w.astype(jnp.bfloat16),
                    preferred_element_type=jnp.float32) + b
        if i < len(params) - 1:
            h = jnp.maximum(y, 0.0).astype(jnp.bfloat16)
    return y


if __name__ == "__main__":
    # Small shapes mirroring the module's 6-layer funnel
    # (stand-in for in=10000, h=2000/500/200/50/10, out=3).
    B = 256
    dims = (512, 256, 128, 64, 32, 16, 8)

    key = jax.random.PRNGKey(0)
    key, xkey = jax.random.split(key)
    x = jax.random.normal(xkey, (B, dims[0]), dtype=jnp.float32)
    params = init_params(key, dims)

    packed = pack_params(params)          # one-time parameter packing (bf16 slab + bias slab)
    out = mlp_forward(x, packed)
    out = jax.block_until_ready(out)

    ref = mlp_reference(x, params)
    assert out.shape == (B, dims[-1])
    assert jnp.allclose(out, ref, atol=1e-2, rtol=1e-2), "mismatch vs pure-JAX reference"

    print("KERNEL_OK")
</pallas_src>

<mosaic_0001>
module attributes {stable_mosaic.version = 11 : i64} {
  func.func @kernel(%arg0: i32, %arg1: memref<256x512xf32, #tpu.memory_space<vmem>>, %arg2: memref<1008x256xbf16, #tpu.memory_space<vmem>>, %arg3: memref<6x256xf32, #tpu.memory_space<vmem>>, %arg4: memref<256x128xf32, #tpu.memory_space<vmem>>) attributes {dimension_semantics = [#tpu.dimension_semantics<parallel>], iteration_bounds = array<i64: 1>, scalar_prefetch = 0 : i64, scratch_operands = 0 : i64, tpu.core_type = #tpu.core_type<tc>, window_params = [{transform_indices = @transform_0, window_bounds = array<i64: 256, 512>}, {pipeline_mode = #tpu.pipeline_mode<synchronous>, transform_indices = @transform_1, window_bounds = array<i64: 1008, 256>}, {pipeline_mode = #tpu.pipeline_mode<synchronous>, transform_indices = @transform_2, window_bounds = array<i64: 6, 256>}, {transform_indices = @transform_3, window_bounds = array<i64: 256, 128>}]} {
    %c0 = arith.constant 0 : index
    %c0_0 = arith.constant 0 : index
    %0 = vector.load %arg1[%c0, %c0_0] : memref<256x512xf32, #tpu.memory_space<vmem>>, vector<256x512xf32>
    %1 = arith.truncf %0 : vector<256x512xf32> to vector<256x512xbf16>
    %c0_1 = arith.constant 0 : index
    %c0_2 = arith.constant 0 : index
    %2 = vector.load %arg2[%c0_1, %c0_2] : memref<1008x256xbf16, #tpu.memory_space<vmem>>, vector<512x256xbf16>
    %c0_3 = arith.constant 0 : index
    %c0_4 = arith.constant 0 : index
    %3 = vector.load %arg3[%c0_3, %c0_4] : memref<6x256xf32, #tpu.memory_space<vmem>>, vector<1x256xf32>
    %cst = arith.constant dense<0.000000e+00> : vector<256x256xf32>
    %4 = tpu.matmul %1, %2, %cst {dimension_numbers = #tpu.dot_dimension_numbers<[1], [0], [0], [1], [0, 0, 1, 1], [], []>} : vector<256x512xbf16>, vector<512x256xbf16>, vector<256x256xf32> -> vector<256x256xf32>
    %5 = vector.broadcast %3 : vector<1x256xf32> to vector<256x256xf32>
    %6 = arith.addf %4, %5 : vector<256x256xf32>
    %cst_5 = arith.constant 0.000000e+00 : f32
    %7 = vector.broadcast %cst_5 : f32 to vector<256x256xf32>
    %8 = arith.maximumf %6, %7 : vector<256x256xf32>
    %9 = arith.truncf %8 : vector<256x256xf32> to vector<256x256xbf16>
    %c512 = arith.constant 512 : index
    %c0_6 = arith.constant 0 : index
    %10 = vector.load %arg2[%c512, %c0_6] : memref<1008x256xbf16, #tpu.memory_space<vmem>>, vector<256x128xbf16>
    %c1 = arith.constant 1 : index
    %c0_7 = arith.constant 0 : index
    %11 = vector.load %arg3[%c1, %c0_7] : memref<6x256xf32, #tpu.memory_space<vmem>>, vector<1x128xf32>
    %cst_8 = arith.constant dense<0.000000e+00> : vector<256x128xf32>
    %12 = tpu.matmul %9, %10, %cst_8 {dimension_numbers = #tpu.dot_dimension_numbers<[1], [0], [0], [1], [0, 0, 1, 1], [], []>} : vector<256x256xbf16>, vector<256x128xbf16>, vector<256x128xf32> -> vector<256x128xf32>
    %13 = vector.broadcast %11 : vector<1x128xf32> to vector<256x128xf32>
    %14 = arith.addf %12, %13 : vector<256x128xf32>
    %cst_9 = arith.constant 0.000000e+00 : f32
    %15 = vector.broadcast %cst_9 : f32 to vector<256x128xf32>
    %16 = arith.maximumf %14, %15 : vector<256x128xf32>
    %17 = arith.truncf %16 : vector<256x128xf32> to vector<256x128xbf16>
    %c768 = arith.constant 768 : index
    %c0_10 = arith.constant 0 : index
    %18 = vector.load %arg2[%c768, %c0_10] : memref<1008x256xbf16, #tpu.memory_space<vmem>>, vector<128x64xbf16>
    %c2 = arith.constant 2 : index
    %c0_11 = arith.constant 0 : index
    %19 = vector.load %arg3[%c2, %c0_11] : memref<6x256xf32, #tpu.memory_space<vmem>>, vector<1x64xf32>
    %cst_12 = arith.constant dense<0.000000e+00> : vector<256x64xf32>
    %20 = tpu.matmul %17, %18, %cst_12 {dimension_numbers = #tpu.dot_dimension_numbers<[1], [0], [0], [1], [0, 0, 1, 1], [], []>} : vector<256x128xbf16>, vector<128x64xbf16>, vector<256x64xf32> -> vector<256x64xf32>
    %21 = vector.broadcast %19 : vector<1x64xf32> to vector<256x64xf32>
    %22 = arith.addf %20, %21 : vector<256x64xf32>
    %cst_13 = arith.constant 0.000000e+00 : f32
    %23 = vector.broadcast %cst_13 : f32 to vector<256x64xf32>
    %24 = arith.maximumf %22, %23 : vector<256x64xf32>
    %25 = arith.truncf %24 : vector<256x64xf32> to vector<256x64xbf16>
    %c896 = arith.constant 896 : index
    %c0_14 = arith.constant 0 : index
    %26 = vector.load %arg2[%c896, %c0_14] : memref<1008x256xbf16, #tpu.memory_space<vmem>>, vector<64x32xbf16>
    %c3 = arith.constant 3 : index
    %c0_15 = arith.constant 0 : index
    %27 = vector.load %arg3[%c3, %c0_15] : memref<6x256xf32, #tpu.memory_space<vmem>>, vector<1x32xf32>
    %cst_16 = arith.constant dense<0.000000e+00> : vector<256x32xf32>
    %28 = tpu.matmul %25, %26, %cst_16 {dimension_numbers = #tpu.dot_dimension_numbers<[1], [0], [0], [1], [0, 0, 1, 1], [], []>} : vector<256x64xbf16>, vector<64x32xbf16>, vector<256x32xf32> -> vector<256x32xf32>
    %29 = vector.broadcast %27 : vector<1x32xf32> to vector<256x32xf32>
    %30 = arith.addf %28, %29 : vector<256x32xf32>
    %cst_17 = arith.constant 0.000000e+00 : f32
    %31 = vector.broadcast %cst_17 : f32 to vector<256x32xf32>
    %32 = arith.maximumf %30, %31 : vector<256x32xf32>
    %33 = arith.truncf %32 : vector<256x32xf32> to vector<256x32xbf16>
    %c960 = arith.constant 960 : index
    %c0_18 = arith.constant 0 : index
    %34 = vector.load %arg2[%c960, %c0_18] : memref<1008x256xbf16, #tpu.memory_space<vmem>>, vector<32x16xbf16>
    %c4 = arith.constant 4 : index
    %c0_19 = arith.constant 0 : index
    %35 = vector.load %arg3[%c4, %c0_19] : memref<6x256xf32, #tpu.memory_space<vmem>>, vector<1x16xf32>
    %cst_20 = arith.constant dense<0.000000e+00> : vector<256x16xf32>
    %36 = tpu.matmul %33, %34, %cst_20 {dimension_numbers = #tpu.dot_dimension_numbers<[1], [0], [0], [1], [0, 0, 1, 1], [], []>} : vector<256x32xbf16>, vector<32x16xbf16>, vector<256x16xf32> -> vector<256x16xf32>
    %37 = vector.broadcast %35 : vector<1x16xf32> to vector<256x16xf32>
    %38 = arith.addf %36, %37 : vector<256x16xf32>
    %cst_21 = arith.constant 0.000000e+00 : f32
    %39 = vector.broadcast %cst_21 : f32 to vector<256x16xf32>
    %40 = arith.maximumf %38, %39 : vector<256x16xf32>
    %41 = arith.truncf %40 : vector<256x16xf32> to vector<256x16xbf16>
    %c992 = arith.constant 992 : index
    %c0_22 = arith.constant 0 : index
    %42 = vector.load %arg2[%c992, %c0_22] : memref<1008x256xbf16, #tpu.memory_space<vmem>>, vector<16x128xbf16>
    %c5 = arith.constant 5 : index
    %c0_23 = arith.constant 0 : index
    %43 = vector.load %arg3[%c5, %c0_23] : memref<6x256xf32, #tpu.memory_space<vmem>>, vector<1x128xf32>
    %cst_24 = arith.constant dense<0.000000e+00> : vector<256x128xf32>
    %44 = tpu.matmul %41, %42, %cst_24 {dimension_numbers = #tpu.dot_dimension_numbers<[1], [0], [0], [1], [0, 0, 1, 1], [], []>} : vector<256x16xbf16>, vector<16x128xbf16>, vector<256x128xf32> -> vector<256x128xf32>
    %45 = vector.broadcast %43 : vector<1x128xf32> to vector<256x128xf32>
    %46 = arith.addf %44, %45 : vector<256x128xf32>
    %c0_25 = arith.constant 0 : index
    %c0_26 = arith.constant 0 : index
    %47 = vector.load %arg4[%c0_25, %c0_26] : memref<256x128xf32, #tpu.memory_space<vmem>>, vector<256x128xf32>
    tpu.vector_store %arg4[%c0_25, %c0_26], %46 {strides = array<i32>} : memref<256x128xf32, #tpu.memory_space<vmem>>, vector<256x128xf32>,
    return
  }
  func.func @transform_0(%arg0: i32) -> (i32, i32) {
    %c0_i32 = arith.constant 0 : i32
    %c0_i32_0 = arith.constant 0 : i32
    return %arg0, %c0_i32 : i32, i32
  }
  func.func @transform_1(%arg0: i32) -> (i32, i32) {
    %c0_i32 = arith.constant 0 : i32
    %c0_i32_0 = arith.constant 0 : i32
    %c0_i32_1 = arith.constant 0 : i32
    return %c0_i32, %c0_i32_0 : i32, i32
  }
  func.func @transform_2(%arg0: i32) -> (i32, i32) {
    %c0_i32 = arith.constant 0 : i32
    %c0_i32_0 = arith.constant 0 : i32
    %c0_i32_1 = arith.constant 0 : i32
    return %c0_i32, %c0_i32_0 : i32, i32
  }
  func.func @transform_3(%arg0: i32) -> (i32, i32) {
    %c0_i32 = arith.constant 0 : i32
    %c0_i32_0 = arith.constant 0 : i32
    return %arg0, %c0_i32 : i32, i32
  }
}

</mosaic_0001>

<bundles_post_ra>
// kernel: _mlp_forward_jit.1
= control target key start
LH: loop header
LB: loop body
LE: loop exit
PB: predicated region body
PF: predicated region fallthrough
CT: control target
= control target key end

     0   :  { %8 = vsyncpa [#allocation3], 0  ;;  %s3830_s0 = inlined_call_operand.hbm [shape: f32[256,512], index: 0, kind: input, shape index: {}]   ;;  %s3831_s1 = inlined_call_operand.hbm [shape: bf16[1008,256], index: 1, kind: input, shape index: {}]   ;;  %s3832_s2 = inlined_call_operand.hbm [shape: f32[6,256], index: 2, kind: input, shape index: {}]   ;;  %s3833_s3 = inlined_call_operand.vmem [shape: f32[256,128], index: 3, kind: output, shape index: {}]  }
   0x1   :  { %9 = vsyncpa [#allocation5], 0  ;;  %s3385_s12 = smov [#allocation4]   ;;  %s3315_s16 = scalar_lea.hbm %s3831_s1, 16128 }
   0x2   :  { %s27_s13 = sshll.u32 %s3385_s12, 4  ;;  %p3316_p0 = scmp.ne.s32.totalorder %s3831_s1, %s3315_s16  ;;  %s28_s13 = int_to_ptr.vmem [resolvable:$true] %s27_s13 }
   0x3   :  { %p3319_p1 = scmp.lt.u32.totalorder %s3315_s16, %s3831_s1 }
   0x5   :  { %p3321_p2 = pnand %p3319_p1, %p3316_p0 }
   0x7   :  { %3324 = shalt.err (!%p3321_p2)
}
   0x8   :  { %s3325_s21 = scalar_lea.vmem %s28_s13, 16128  ;;  %p3330_p4 = scmp.lt.s32.totalorder %s28_s13, %s28_s13 }
   0x9   :  { %p3326_p3 = scmp.ne.s32.totalorder %s28_s13, %s3325_s21  ;;  %p3331_p5 = scmp.lt.s32.totalorder %s3325_s21, %s3325_s21 }
   0xb   :  { %p3332_p6 = por %p3331_p5, %p3330_p4 }
   0xd   :  { %p3333_p7 = pnand %p3332_p6, %p3326_p3 }
   0xf   :  { %3336 = shalt.err (!%p3333_p7)
}
  0x10   :  { %s3386_s22 = smov 128   ;;  %s3387_s23 = smov 8  }
  0x11   :  { %33 = dma.hbm_to_vmem [thread:$0]  %s3831_s1, 16128, %s28_s13, [#allocation5], %s3386_s22, %s3386_s22, %s3387_s23  }
  0x12   :  { %s3388_s26 = smov [#allocation2]   ;;  %s3337_s30 = scalar_lea.hbm %s3830_s0, 16384 }
  0x13   :  { %s15_s27 = sshll.u32 %s3388_s26, 4  ;;  %p3338_p8 = scmp.ne.s32.totalorder %s3830_s0, %s3337_s30  ;;  %s16_s27 = int_to_ptr.vmem [resolvable:$true] %s15_s27 }
  0x14   :  { %p3341_p9 = scmp.lt.u32.totalorder %s3337_s30, %s3830_s0 }
  0x16   :  { %p3343_p10 = pnand %p3341_p9, %p3338_p8 }
  0x18   :  { %3346 = shalt.err (!%p3343_p10)
}
  0x19   :  { %s3347_s8 = scalar_lea.vmem %s16_s27, 16384  ;;  %p3352_p12 = scmp.lt.s32.totalorder %s16_s27, %s16_s27 }
  0x1a   :  { %p3348_p11 = scmp.ne.s32.totalorder %s16_s27, %s3347_s8  ;;  %p3353_p13 = scmp.lt.s32.totalorder %s3347_s8, %s3347_s8 }
  0x1c   :  { %p3354_p0 = por %p3353_p13, %p3352_p12 }
  0x1e   :  { %p3355_p1 = pnand %p3354_p0, %p3348_p11 }
  0x20   :  { %3358 = shalt.err (!%p3355_p1)
}
  0x21   :  { %s3389_s1 = smov 512   ;;  %s3390_s9 = smov 32  }
  0x22   :  { %21 = dma.hbm_to_vmem [thread:$0]  %s3830_s0, 16384, %s16_s27, [#allocation3], %s3389_s1, %s3389_s1, %s3390_s9  }
  0x23   :  { %s3391_s12 = smov [#allocation6]   ;;  %s3359_s16 = scalar_lea.hbm %s3832_s2, 256 }
  0x24   :  { %s40_s13 = sshll.u32 %s3391_s12, 4  ;;  %p3360_p2 = scmp.ne.s32.totalorder %s3832_s2, %s3359_s16  ;;  %s41_s13 = int_to_ptr.vmem [resolvable:$true] %s40_s13 }
  0x25   :  { %p3363_p3 = scmp.lt.u32.totalorder %s3359_s16, %s3832_s2 }
  0x27   :  { %p3365_p4 = pnand %p3363_p3, %p3360_p2 }
  0x29   :  { %3368 = shalt.err (!%p3365_p4)
}
  0x2a   :  { %s3369_s21 = scalar_lea.vmem %s41_s13, 256  ;;  %p3374_p6 = scmp.lt.s32.totalorder %s41_s13, %s41_s13 }
  0x2b   :  { %p3370_p5 = scmp.ne.s32.totalorder %s41_s13, %s3369_s21  ;;  %p3375_p7 = scmp.lt.s32.totalorder %s3369_s21, %s3369_s21 }
  0x2d   :  { %p3376_p8 = por %p3375_p7, %p3374_p6 }
  0x2f   :  { %p3377_p9 = pnand %p3376_p8, %p3370_p5 }
  0x31   :  { %3380 = shalt.err (!%p3377_p9)
}
  0x32   :  { %43 = dma.hbm_to_vmem [thread:$0]  %s3832_s2, 256, %s41_s13, [#allocation5]  }
  0x33   :  { %3381 = dma.done.wait [#allocation3], 16384  }
  0x34   :  { %3382 = vsyncadd [#allocation3], 4294950912 }
  0x35   :  { %3383 = dma.done.wait [#allocation5], 16384  }
  0x36   :  { %3384 = vsyncadd [#allocation5], 4294950912  ;;  %v3188_v0 = vld [vmem:[#allocation4 + $0x4] ss:$8 sps:$4 sm:$0xff]   ;;  %v3190_v1 = vld [vmem:[#allocation4] ss:$8 sps:$4 sm:$0xff]  }
  0x37   :  { %642 = vmatprep.subr.bf16.mxu0 %v3188_v0  ;;  %v3191_v2 = vld [vmem:[#allocation4 + $0x14] ss:$8 sps:$4 sm:$0xff]   ;;  %v3193_v3 = vld [vmem:[#allocation4 + $0x10] ss:$8 sps:$4 sm:$0xff]   ;;  %v3194_v4 = vld [vmem:[#allocation4 + $0x24] ss:$8 sps:$4 sm:$0xff]  }
  0x38   :  { %643 = vmatpush1.bf16.msra.mxu0 %v3190_v1  ;;  %v3196_v5 = vld [vmem:[#allocation4 + $0x20] ss:$8 sps:$4 sm:$0xff]   ;;  %v3197_v6 = vld [vmem:[#allocation4 + $0x34] ss:$8 sps:$4 sm:$0xff]   ;;  %v3199_v7 = vld [vmem:[#allocation4 + $0x30] ss:$8 sps:$4 sm:$0xff]  }
  0x39   :  { %644 = vmatprep.subr.bf16.mxu0 %v3191_v2  ;;  %v3200_v8 = vld [vmem:[#allocation4 + $0x44] ss:$8 sps:$4 sm:$0xff]   ;;  %v3202_v9 = vld [vmem:[#allocation4 + $0x40] ss:$8 sps:$4 sm:$0xff]   ;;  %v3203_v10 = vld [vmem:[#allocation4 + $0x54] ss:$8 sps:$4 sm:$0xff]  }
  0x3a   :  { %v3205_v11 = vld [vmem:[#allocation4 + $0x50] ss:$8 sps:$4 sm:$0xff]   ;;  %v3206_v12 = vld [vmem:[#allocation4 + $0x64] ss:$8 sps:$4 sm:$0xff]   ;;  %v3208_v16 = vld [vmem:[#allocation4 + $0x60] ss:$8 sps:$4 sm:$0xff]  }
  0x3b   :  { %v55_v13 = vld [vmem:[#allocation2 + $0x8] sm:$0xff]  ;;  %v3209_v17 = vld [vmem:[#allocation4 + $0x74] ss:$8 sps:$4 sm:$0xff]   ;;  %v3211_v18 = vld [vmem:[#allocation4 + $0x70] ss:$8 sps:$4 sm:$0xff]   ;;  %vm1769_vm0 = vcmask 523264  }
  0x3c   :  { %645 = vmatpush1.bf16.msra.mxu0 %v3193_v3  ;;  %v59_v14 = vld [vmem:[#allocation2 + $0x28] sm:$0xff]  ;;  %v3215_v21 = vld [vmem:[#allocation4 + $0x94] ss:$8 sps:$4 sm:$0xff]   ;;  %v3217_v22 = vld [vmem:[#allocation4 + $0x90] ss:$8 sps:$4 sm:$0xff]   ;;  %vm2044_vm1 = vcmask 261120  }
  0x3d   :  { %646 = vmatprep.subr.bf16.mxu0 %v3194_v4  ;;  %v183_v15 = vpack.c.bf16 %v59_v14, %v55_v13  ;;  %v3212_v19 = vld [vmem:[#allocation4 + $0x84] ss:$8 sps:$4 sm:$0xff]   ;;  %v3214_v20 = vld [vmem:[#allocation4 + $0x80] ss:$8 sps:$4 sm:$0xff]   ;;  %v3221_v25 = vld [vmem:[#allocation4 + $0xb4] ss:$8 sps:$4 sm:$0xff]  }
  0x3e   :  { %v3218_v23 = vld [vmem:[#allocation4 + $0xa4] ss:$8 sps:$4 sm:$0xff]   ;;  %v3220_v24 = vld [vmem:[#allocation4 + $0xa0] ss:$8 sps:$4 sm:$0xff]   ;;  %v3223_v26 = vld [vmem:[#allocation4 + $0xb0] ss:$8 sps:$4 sm:$0xff]  }
  0x3f   :  { %674 = vmatprep.mubr.bf16.mxu0 %v183_v15  ;;  %v3224_v27 = vld [vmem:[#allocation4 + $0xc4] ss:$8 sps:$4 sm:$0xff]   ;;  %v3226_v28 = vld [vmem:[#allocation4 + $0xc0] ss:$8 sps:$4 sm:$0xff]   ;;  %v3227_v29 = vld [vmem:[#allocation4 + $0xd4] ss:$8 sps:$4 sm:$0xff]  }
  0x40   :  { %647 = vmatpush1.bf16.msra.mxu0 %v3196_v5  ;;  %v3229_v30 = vld [vmem:[#allocation4 + $0xd0] ss:$8 sps:$4 sm:$0xff]   ;;  %v3230_v31 = vld [vmem:[#allocation4 + $0xe4] ss:$8 sps:$4 sm:$0xff]   ;;  %v3232_v32 = vld [vmem:[#allocation4 + $0xe0] ss:$8 sps:$4 sm:$0xff]  }
  0x41   :  { %648 = vmatprep.subr.bf16.mxu0 %v3197_v6  ;;  %v3233_v33 = vld [vmem:[#allocation4 + $0xf4] ss:$8 sps:$4 sm:$0xff]   ;;  %v3235_v34 = vld [vmem:[#allocation4 + $0xf0] ss:$8 sps:$4 sm:$0xff]   ;;  %v54_v35 = vld [vmem:[#allocation2] sm:$0xff]  ;;  %vm2311_vm2 = vcmask 130048  }
  0x42   :  { %v58_v36 = vld [vmem:[#allocation2 + $0x20] sm:$0xff]  ;;  %v63_v38 = vld [vmem:[#allocation2 + $0x48] sm:$0xff]  ;;  %v3241_v43 = vld [vmem:[#allocation4 + $0x114] ss:$8 sps:$4 sm:$0xff]  }
  0x43   :  { %v3238_v37 = vld [vmem:[#allocation4 + $0x104] ss:$8 sps:$4 sm:$0xff]   ;;  %v182_v40 = vpack.c.bf16 %v58_v36, %v54_v35  ;;  %v3236_v41 = vld [vmem:[#allocation4 + $0x100] ss:$8 sps:$4 sm:$0xff]   ;;  %v3239_v46 = vld [vmem:[#allocation4 + $0x110] ss:$8 sps:$4 sm:$0xff]  }
  0x44   :  { %649 = vmatpush1.bf16.msra.mxu0 %v3199_v7  ;;  %v67_v39 = vld [vmem:[#allocation2 + $0x68] sm:$0xff]  ;;  %v62_v44 = vld [vmem:[#allocation2 + $0x40] sm:$0xff]  ;;  %v3247_v52 = vld [vmem:[#allocation4 + $0x134] ss:$8 sps:$4 sm:$0xff]  }
  0x45   :  { %650 = vmatprep.subr.bf16.mxu0 %v3200_v8  ;;  %v187_v42 = vpack.c.bf16 %v67_v39, %v63_v38  ;;  %v66_v45 = vld [vmem:[#allocation2 + $0x60] sm:$0xff]  ;;  %v71_v47 = vld [vmem:[#allocation2 + $0x88] sm:$0xff]  ;;  %v3245_v58 = vld [vmem:[#allocation4 + $0x130] ss:$8 sps:$4 sm:$0xff]  }
  0x46   :  { %v75_v48 = vld [vmem:[#allocation2 + $0xa8] sm:$0xff]  ;;  %v186_v51 = vpack.c.bf16 %v66_v45, %v62_v44  ;;  %v70_v54 = vld [vmem:[#allocation2 + $0x80] sm:$0xff]  ;;  %v3253_v62 = vld [vmem:[#allocation4 + $0x154] ss:$8 sps:$4 sm:$0xff]  }
  0x47   :  { %v3244_v49 = vld [vmem:[#allocation4 + $0x124] ss:$8 sps:$4 sm:$0xff]   ;;  %v3242_v50 = vld [vmem:[#allocation4 + $0x120] ss:$8 sps:$4 sm:$0xff]   ;;  %v191_v53 = vpack.c.bf16 %v75_v48, %v71_v47  ;;  %v3251_v4 = vld [vmem:[#allocation4 + $0x150] ss:$8 sps:$4 sm:$0xff]  }
  0x48   :  { %651 = vmatpush1.bf16.msra.mxu0 %v3202_v9  ;;  %v74_v55 = vld [vmem:[#allocation2 + $0xa0] sm:$0xff]  ;;  %v79_v56 = vld [vmem:[#allocation2 + $0xc8] sm:$0xff]  ;;  %v3259_v8 = vld [vmem:[#allocation4 + $0x174] ss:$8 sps:$4 sm:$0xff]  }
  0x49   :  { %652 = vmatprep.subr.bf16.mxu0 %v3203_v10  ;;  %v83_v57 = vld [vmem:[#allocation2 + $0xe8] sm:$0xff]  ;;  %v190_v61 = vpack.c.bf16 %v74_v55, %v70_v54  ;;  %v78_v0 = vld [vmem:[#allocation2 + $0xc0] sm:$0xff]  ;;  %v3277_v39 = vld [vmem:[#allocation4 + $0x1d4] ss:$8 sps:$4 sm:$0xff]  }
  0x4a   :  { %v3250_v59 = vld [vmem:[#allocation4 + $0x144] ss:$8 sps:$4 sm:$0xff]   ;;  %v3248_v60 = vld [vmem:[#allocation4 + $0x140] ss:$8 sps:$4 sm:$0xff]   ;;  %v195_v63 = vpack.c.bf16 %v83_v57, %v79_v56 }
  0x4b   :  { %v82_v1 = vld [vmem:[#allocation2 + $0xe0] sm:$0xff]  ;;  %v87_v2 = vld [vmem:[#allocation2 + $0x108] sm:$0xff] }
  0x4c   :  { %653 = vmatpush1.bf16.msra.mxu0 %v3205_v11  ;;  %v91_v3 = vld [vmem:[#allocation2 + $0x128] sm:$0xff]  ;;  %v194_v7 = vpack.c.bf16 %v82_v1, %v78_v0  ;;  %v86_v10 = vld [vmem:[#allocation2 + $0x100] sm:$0xff] }
  0x4d   :  { %654 = vmatprep.subr.bf16.mxu0 %v3206_v12  ;;  %v3256_v5 = vld [vmem:[#allocation4 + $0x164] ss:$8 sps:$4 sm:$0xff]   ;;  %v3254_v6 = vld [vmem:[#allocation4 + $0x160] ss:$8 sps:$4 sm:$0xff]   ;;  %v199_v9 = vpack.c.bf16 %v91_v3, %v87_v2  ;;  %v3257_v12 = vld [vmem:[#allocation4 + $0x170] ss:$8 sps:$4 sm:$0xff]  }
  0x4e   :  { %v90_v11 = vld [vmem:[#allocation2 + $0x120] sm:$0xff]  ;;  %v95_v13 = vld [vmem:[#allocation2 + $0x148] sm:$0xff] }
  0x4f   :  { %v99_v14 = vld [vmem:[#allocation2 + $0x168] sm:$0xff]  ;;  %v126_v57 = vld [vmem:[#allocation2 + $0x240] sm:$0xff] }
  0x50   :  { %655 = vmatpush1.bf16.msra.mxu0 %v3208_v16  ;;  %v3262_v15 = vld [vmem:[#allocation4 + $0x184] ss:$8 sps:$4 sm:$0xff]   ;;  %v198_v16 = vpack.c.bf16 %v90_v11, %v86_v10  ;;  %v3272_v38 = vld [vmem:[#allocation4 + $0x1c0] ss:$8 sps:$4 sm:$0xff]  }
  0x51   :  { %656 = vmatprep.subr.bf16.mxu0 %v3209_v17  ;;  %v203_v17 = vpack.c.bf16 %v99_v14, %v95_v13  ;;  %v3274_v35 = vld [vmem:[#allocation4 + $0x1c4] ss:$8 sps:$4 sm:$0xff]   ;;  %v3278_v48 = vld [vmem:[#allocation4 + $0x1e0] ss:$8 sps:$4 sm:$0xff]  }
  0x52   :  { %v123_v44 = vld [vmem:[#allocation2 + $0x228] sm:$0xff]  ;;  %v138_v0 = vld [vmem:[#allocation2 + $0x2a0] sm:$0xff] }
  0x53   :  { %v3280_v45 = vld [vmem:[#allocation4 + $0x1e4] ss:$8 sps:$4 sm:$0xff]  }
  0x54   :  { %657 = vmatpush1.bf16.msra.mxu0 %v3211_v18  ;;  %v3260_v18 = vld [vmem:[#allocation4 + $0x180] ss:$8 sps:$4 sm:$0xff]  }
  0x55   :  { %658 = vmatprep.subr.bf16.mxu0 %v3212_v19  ;;  %v3265_v19 = vld [vmem:[#allocation4 + $0x194] ss:$8 sps:$4 sm:$0xff]   ;;  %v131_v54 = vld [vmem:[#allocation2 + $0x268] sm:$0xff]  ;;  %v150_v11 = vld [vmem:[#allocation2 + $0x300] sm:$0xff] }
  0x56   :  { %v143_v1 = vld [vmem:[#allocation2 + $0x2c8] sm:$0xff] }
  0x57   :  { %v147_v2 = vld [vmem:[#allocation2 + $0x2e8] sm:$0xff] }
  0x58   :  { %659 = vmatpush1.bf16.msra.mxu0 %v3214_v20  ;;  %v94_v20 = vld [vmem:[#allocation2 + $0x140] sm:$0xff]  ;;  %v159_v13 = vld [vmem:[#allocation2 + $0x348] sm:$0xff] }
  0x59   :  { %660 = vmatprep.subr.bf16.mxu0 %v3215_v21  ;;  %v98_v21 = vld [vmem:[#allocation2 + $0x160] sm:$0xff]  ;;  %v163_v14 = vld [vmem:[#allocation2 + $0x368] sm:$0xff] }
  0x5c   :  { %661 = vmatpush1.bf16.msra.mxu0 %v3217_v22  ;;  %v3263_v22 = vld [vmem:[#allocation4 + $0x190] ss:$8 sps:$4 sm:$0xff]  }
  0x5d   :  { %662 = vmatprep.subr.bf16.mxu0 %v3218_v23  ;;  %v103_v23 = vld [vmem:[#allocation2 + $0x188] sm:$0xff] }
  0x60   :  { %663 = vmatpush1.bf16.msra.mxu0 %v3220_v24  ;;  %v107_v24 = vld [vmem:[#allocation2 + $0x1a8] sm:$0xff] }
  0x61   :  { %664 = vmatprep.subr.bf16.mxu0 %v3221_v25  ;;  %v3268_v25 = vld [vmem:[#allocation4 + $0x1a4] ss:$8 sps:$4 sm:$0xff]  }
  0x64   :  { %665 = vmatpush1.bf16.msra.mxu0 %v3223_v26  ;;  %v202_v26 = vpack.c.bf16 %v98_v21, %v94_v20  ;;  %v171_v20 = vld [vmem:[#allocation2 + $0x3a8] sm:$0xff] }
  0x65   :  { %666 = vmatprep.subr.bf16.mxu0 %v3224_v27  ;;  %v207_v27 = vpack.c.bf16 %v107_v24, %v103_v23  ;;  %v166_v23 = vld [vmem:[#allocation2 + $0x380] sm:$0xff] }
  0x66   :  { %v170_v24 = vld [vmem:[#allocation2 + $0x3a0] sm:$0xff] }
  0x68   :  { %667 = vmatpush1.bf16.msra.mxu0 %v3226_v28  ;;  %v3266_v28 = vld [vmem:[#allocation4 + $0x1a0] ss:$8 sps:$4 sm:$0xff]  }
  0x69   :  { %668 = vmatprep.subr.bf16.mxu0 %v3227_v29  ;;  %v3271_v29 = vld [vmem:[#allocation4 + $0x1b4] ss:$8 sps:$4 sm:$0xff]  }
  0x6c   :  { %669 = vmatpush1.bf16.msra.mxu0 %v3229_v30  ;;  %v102_v30 = vld [vmem:[#allocation2 + $0x180] sm:$0xff] }
  0x6d   :  { %670 = vmatprep.subr.bf16.mxu0 %v3230_v31  ;;  %v106_v31 = vld [vmem:[#allocation2 + $0x1a0] sm:$0xff] }
  0x6e   :  { %v206_v36 = vpack.c.bf16 %v106_v31, %v102_v30  ;;  %v178_v30 = vld [vmem:[#allocation2 + $0x3e0] sm:$0xff]  ;;  %v57_v31 = vld [vmem:[#allocation2 + $0x18] sm:$0xff] }
  0x70   :  { %671 = vmatpush1.bf16.msra.mxu0 %v3232_v32  ;;  %v3269_v32 = vld [vmem:[#allocation4 + $0x1b0] ss:$8 sps:$4 sm:$0xff]  }
  0x71   :  { %672 = vmatprep.subr.bf16.mxu0 %v3233_v33  ;;  %v111_v33 = vld [vmem:[#allocation2 + $0x1c8] sm:$0xff] }
  0x74   :  { %673 = vmatpush1.bf16.msra.mxu0 %v3235_v34  ;;  %v115_v34 = vld [vmem:[#allocation2 + $0x1e8] sm:$0xff] }
  0x75   :  { %835 = vmatprep.subr.bf16.mxu0 %v3238_v37  ;;  %v211_v37 = vpack.c.bf16 %v115_v34, %v111_v33 }
  0x77   :  { %675 = vmatmul.mubr.bf16.vlgmr.msra.gmra.mrb[0].mxu0 %v182_v40  ;;  %v110_v40 = vld [vmem:[#allocation2 + $0x1c0] sm:$0xff] }
  0x78   :  { %836 = vmatpush1.bf16.msra.mxu0 %v3236_v41  ;;  %684 = vmatprep.mubr.bf16.mxu0 %v187_v42  ;;  %v114_v41 = vld [vmem:[#allocation2 + $0x1e0] sm:$0xff]  ;;  %v3275_v42 = vld [vmem:[#allocation4 + $0x1d0] ss:$8 sps:$4 sm:$0xff]  }
  0x79   :  { %837 = vmatprep.subr.bf16.mxu0 %v3241_v43  ;;  %v119_v43 = vld [vmem:[#allocation2 + $0x208] sm:$0xff] }
  0x7a   :  { %v215_v47 = vpack.c.bf16 %v123_v44, %v119_v43  ;;  %v3288_v44 = vld [vmem:[#allocation4 + $0x2a0] ss:$8 sps:$4 sm:$0xff]  }
  0x7c   :  { %838 = vmatpush1.bf16.msra.mxu0 %v3239_v46  ;;  %v210_v46 = vpack.c.bf16 %v114_v41, %v110_v40  ;;  %v65_v40 = vld [vmem:[#allocation2 + $0x58] sm:$0xff] }
  0x7d   :  { %839 = vmatprep.subr.bf16.mxu0 %v3244_v49  ;;  %v3283_v49 = vld [vmem:[#allocation4 + $0x1f4] ss:$8 sps:$4 sm:$0xff]  }
  0x7e   :  { %v69_v41 = vld [vmem:[#allocation2 + $0x78] sm:$0xff] }
  0x7f   :  { %685 = vmatmul.mubr.bf16.gmra.mrb[4].mxu0 %v186_v51  ;;  %v122_v51 = vld [vmem:[#allocation2 + $0x220] sm:$0xff] }
  0x80   :  { %694 = vmatprep.mubr.bf16.mxu0 %v191_v53  ;;  %840 = vmatpush1.bf16.msra.mxu0 %v3242_v50  ;;  %v118_v50 = vld [vmem:[#allocation2 + $0x200] sm:$0xff]  ;;  %v127_v53 = vld [vmem:[#allocation2 + $0x248] sm:$0xff] }
  0x81   :  { %841 = vmatprep.subr.bf16.mxu0 %v3247_v52  ;;  %v3281_v52 = vld [vmem:[#allocation4 + $0x1f0] ss:$8 sps:$4 sm:$0xff]   ;;  %v214_v55 = vpack.c.bf16 %v122_v51, %v118_v50  ;;  %v219_v56 = vpack.c.bf16 %v131_v54, %v127_v53  ;;  %v3292_v54 = vld [vmem:[#allocation4 + $0x2c0] ss:$8 sps:$4 sm:$0xff]  }
  0x82   :  { %v73_v50 = vld [vmem:[#allocation2 + $0x98] sm:$0xff] }
  0x83   :  { %v77_v51 = vld [vmem:[#allocation2 + $0xb8] sm:$0xff] }
  0x84   :  { %842 = vmatpush1.bf16.msra.mxu0 %v3245_v58  ;;  %v130_v58 = vld [vmem:[#allocation2 + $0x260] sm:$0xff] }
  0x85   :  { %843 = vmatprep.subr.bf16.mxu0 %v3250_v59  ;;  %v135_v59 = vld [vmem:[#allocation2 + $0x288] sm:$0xff] }
  0x87   :  { %695 = vmatmul.mubr.bf16.gmra.mrb[8].mxu0 %v190_v61  ;;  %v218_v61 = vpack.c.bf16 %v130_v58, %v126_v57  ;;  %v3294_v57 = vld [vmem:[#allocation4 + $0x2d0] ss:$8 sps:$4 sm:$0xff]  }
  0x88   :  { %704 = vmatprep.mubr.bf16.mxu0 %v195_v63  ;;  %844 = vmatpush1.bf16.msra.mxu0 %v3248_v60  ;;  %v139_v60 = vld [vmem:[#allocation2 + $0x2a8] sm:$0xff]  ;;  %v134_v63 = vld [vmem:[#allocation2 + $0x280] sm:$0xff]  ;;  %v72_v58 = vld [vmem:[#allocation2 + $0x90] sm:$0xff] }
  0x89   :  { %845 = vmatprep.subr.bf16.mxu0 %v3253_v62  ;;  %v223_v62 = vpack.c.bf16 %v139_v60, %v135_v59  ;;  %v222_v3 = vpack.c.bf16 %v138_v0, %v134_v63  ;;  %v76_v59 = vld [vmem:[#allocation2 + $0xb0] sm:$0xff]  ;;  %v81_v60 = vld [vmem:[#allocation2 + $0xd8] sm:$0xff] }
  0x8a   :  { %v80_v0 = vld [vmem:[#allocation2 + $0xd0] sm:$0xff] }
  0x8c   :  { %846 = vmatpush1.bf16.msra.mxu0 %v3251_v4  ;;  %v227_v4 = vpack.c.bf16 %v147_v2, %v143_v1  ;;  %v84_v1 = vld [vmem:[#allocation2 + $0xf0] sm:$0xff]  ;;  %v89_v2 = vld [vmem:[#allocation2 + $0x118] sm:$0xff] }
  0x8d   :  { %847 = vmatprep.subr.bf16.mxu0 %v3256_v5  ;;  %v142_v5 = vld [vmem:[#allocation2 + $0x2c0] sm:$0xff] }
  0x8f   :  { %705 = vmatmul.mubr.bf16.gmra.mrb[12].mxu0 %v194_v7  ;;  %v151_v7 = vld [vmem:[#allocation2 + $0x308] sm:$0xff] }
  0x90   :  { %714 = vmatprep.mubr.bf16.mxu0 %v199_v9  ;;  %848 = vmatpush1.bf16.msra.mxu0 %v3254_v6  ;;  %v146_v6 = vld [vmem:[#allocation2 + $0x2e0] sm:$0xff] }
  0x91   :  { %849 = vmatprep.subr.bf16.mxu0 %v3259_v8  ;;  %v155_v8 = vld [vmem:[#allocation2 + $0x328] sm:$0xff]  ;;  %v226_v9 = vpack.c.bf16 %v146_v6, %v142_v5  ;;  %v88_v6 = vld [vmem:[#allocation2 + $0x110] sm:$0xff] }
  0x92   :  { %v231_v10 = vpack.c.bf16 %v155_v8, %v151_v7  ;;  %v92_v7 = vld [vmem:[#allocation2 + $0x130] sm:$0xff]  ;;  %v97_v8 = vld [vmem:[#allocation2 + $0x158] sm:$0xff] }
  0x94   :  { %850 = vmatpush1.bf16.msra.mxu0 %v3257_v12  ;;  %v154_v12 = vld [vmem:[#allocation2 + $0x320] sm:$0xff] }
  0x95   :  { %851 = vmatprep.subr.bf16.mxu0 %v3262_v15  ;;  %v230_v15 = vpack.c.bf16 %v154_v12, %v150_v11  ;;  %v96_v12 = vld [vmem:[#allocation2 + $0x150] sm:$0xff] }
  0x97   :  { %715 = vmatmul.mubr.bf16.gmra.mrb[16].mxu0 %v198_v16  ;;  %v235_v16 = vpack.c.bf16 %v163_v14, %v159_v13  ;;  %v100_v13 = vld [vmem:[#allocation2 + $0x170] sm:$0xff]  ;;  %v105_v14 = vld [vmem:[#allocation2 + $0x198] sm:$0xff] }
  0x98   :  { %724 = vmatprep.mubr.bf16.mxu0 %v203_v17  ;;  %852 = vmatpush1.bf16.msra.mxu0 %v3260_v18  ;;  %v158_v17 = vld [vmem:[#allocation2 + $0x340] sm:$0xff] }
  0x99   :  { %853 = vmatprep.subr.bf16.mxu0 %v3265_v19  ;;  %v162_v18 = vld [vmem:[#allocation2 + $0x360] sm:$0xff]  ;;  %v167_v19 = vld [vmem:[#allocation2 + $0x388] sm:$0xff] }
  0x9a   :  { %v234_v21 = vpack.c.bf16 %v162_v18, %v158_v17  ;;  %v104_v18 = vld [vmem:[#allocation2 + $0x190] sm:$0xff] }
  0x9c   :  { %854 = vmatpush1.bf16.msra.mxu0 %v3263_v22  ;;  %v239_v22 = vpack.c.bf16 %v171_v20, %v167_v19  ;;  %v108_v19 = vld [vmem:[#allocation2 + $0x1b0] sm:$0xff]  ;;  %v113_v20 = vld [vmem:[#allocation2 + $0x1d8] sm:$0xff] }
  0x9d   :  { %855 = vmatprep.subr.bf16.mxu0 %v3268_v25  ;;  %v175_v25 = vld [vmem:[#allocation2 + $0x3c8] sm:$0xff] }
  0x9f   :  { %725 = vmatmul.mubr.bf16.gmra.mrb[20].mxu0 %v202_v26  ;;  %v179_v26 = vld [vmem:[#allocation2 + $0x3e8] sm:$0xff] }
  0xa0   :  { %734 = vmatprep.mubr.bf16.mxu0 %v207_v27  ;;  %856 = vmatpush1.bf16.msra.mxu0 %v3266_v28  ;;  %v238_v27 = vpack.c.bf16 %v170_v24, %v166_v23  ;;  %v243_v28 = vpack.c.bf16 %v179_v26, %v175_v25  ;;  %v112_v24 = vld [vmem:[#allocation2 + $0x1d0] sm:$0xff]  ;;  %v121_v26 = vld [vmem:[#allocation2 + $0x218] sm:$0xff] }
  0xa1   :  { %857 = vmatprep.subr.bf16.mxu0 %v3271_v29  ;;  %v174_v29 = vld [vmem:[#allocation2 + $0x3c0] sm:$0xff]  ;;  %v116_v25 = vld [vmem:[#allocation2 + $0x1f0] sm:$0xff] }
  0xa2   :  { %v242_v33 = vpack.c.bf16 %v178_v30, %v174_v29  ;;  %v120_v30 = vld [vmem:[#allocation2 + $0x210] sm:$0xff] }
  0xa4   :  { %858 = vmatpush1.bf16.msra.mxu0 %v3269_v32  ;;  %v61_v32 = vld [vmem:[#allocation2 + $0x38] sm:$0xff] }
  0xa5   :  { %859 = vmatprep.subr.bf16.mxu0 %v3274_v35  ;;  %v185_v34 = vpack.c.bf16 %v61_v32, %v57_v31  ;;  %v3284_v35 = vld [vmem:[#allocation4 + $0x280] ss:$8 sps:$4 sm:$0xff]   ;;  %v124_v31 = vld [vmem:[#allocation2 + $0x230] sm:$0xff]  ;;  %v129_v32 = vld [vmem:[#allocation2 + $0x258] sm:$0xff] }
  0xa6   :  { %2702 = vmatprep.subr.bf16.mxu1 %v3284_v35 }
  0xa7   :  { %735 = vmatmul.mubr.bf16.gmra.mrb[24].mxu0 %v206_v36  ;;  %v3285_v36 = vld [vmem:[#allocation4 + $0x200] ss:$8 sps:$4 sm:$0xff]  }
  0xa8   :  { %744 = vmatprep.mubr.bf16.mxu0 %v211_v37  ;;  %860 = vmatpush1.bf16.msra.mxu0 %v3272_v38  ;;  %v3286_v37 = vld [vmem:[#allocation4 + $0x290] ss:$8 sps:$4 sm:$0xff]  }
  0xa9   :  { %861 = vmatprep.subr.bf16.mxu0 %v3277_v39  ;;  %v56_v38 = vld [vmem:[#allocation2 + $0x10] sm:$0xff]  ;;  %2703 = vmatpush3.bf16.msra.mxu1 %v3285_v36 }
  0xaa   :  { %v60_v39 = vld [vmem:[#allocation2 + $0x30] sm:$0xff]  ;;  %2704 = vmatprep.subr.bf16.mxu1 %v3286_v37 }
  0xab   :  { %v184_v43 = vpack.c.bf16 %v60_v39, %v56_v38  ;;  %v128_v36 = vld [vmem:[#allocation2 + $0x250] sm:$0xff]  ;;  %v137_v38 = vld [vmem:[#allocation2 + $0x298] sm:$0xff] }
  0xac   :  { %862 = vmatpush1.bf16.msra.mxu0 %v3275_v42  ;;  %v3287_v42 = vld [vmem:[#allocation4 + $0x210] ss:$8 sps:$4 sm:$0xff]  }
  0xad   :  { %863 = vmatprep.subr.bf16.mxu0 %v3280_v45  ;;  %v189_v45 = vpack.c.bf16 %v69_v41, %v65_v40  ;;  %2705 = vmatpush3.bf16.msra.mxu1 %v3287_v42  ;;  %v132_v37 = vld [vmem:[#allocation2 + $0x270] sm:$0xff]  ;;  %v141_v39 = vld [vmem:[#allocation2 + $0x2b8] sm:$0xff] }
  0xae   :  { %2706 = vmatprep.subr.bf16.mxu1 %v3288_v44  ;;  %v220_v40 = vpack.c.bf16 %v132_v37, %v128_v36  ;;  %v225_v41 = vpack.c.bf16 %v141_v39, %v137_v38  ;;  %v136_v42 = vld [vmem:[#allocation2 + $0x290] sm:$0xff]  ;;  %v145_v44 = vld [vmem:[#allocation2 + $0x2d8] sm:$0xff] }
  0xaf   :  { %745 = vmatmul.mubr.bf16.gmra.mrb[28].mxu0 %v210_v46  ;;  %v3289_v46 = vld [vmem:[#allocation4 + $0x220] ss:$8 sps:$4 sm:$0xff]  }
  0xb0   :  { %754 = vmatprep.mubr.bf16.mxu0 %v215_v47  ;;  %864 = vmatpush1.bf16.msra.mxu0 %v3278_v48  ;;  %v3290_v47 = vld [vmem:[#allocation4 + $0x2b0] ss:$8 sps:$4 sm:$0xff]  }
  0xb1   :  { %865 = vmatprep.subr.bf16.mxu0 %v3283_v49  ;;  %v64_v48 = vld [vmem:[#allocation2 + $0x50] sm:$0xff]  ;;  %2707 = vmatpush3.bf16.msra.mxu1 %v3289_v46 }
  0xb2   :  { %v68_v49 = vld [vmem:[#allocation2 + $0x70] sm:$0xff]  ;;  %2708 = vmatprep.subr.bf16.mxu1 %v3290_v47 }
  0xb3   :  { %v188_v53 = vpack.c.bf16 %v68_v49, %v64_v48  ;;  %v144_v48 = vld [vmem:[#allocation2 + $0x2d0] sm:$0xff] }
  0xb4   :  { %866 = vmatpush1.bf16.msra.mxu0 %v3281_v52  ;;  %v3291_v52 = vld [vmem:[#allocation4 + $0x230] ss:$8 sps:$4 sm:$0xff]  }
  0xb5   :  { %2709 = vmatpush3.bf16.msra.mxu1 %v3291_v52  ;;  %v148_v49 = vld [vmem:[#allocation2 + $0x2f0] sm:$0xff]  ;;  %v157_v52 = vld [vmem:[#allocation2 + $0x338] sm:$0xff] }
  0xb6   :  { %2710 = vmatprep.subr.bf16.mxu1 %v3292_v54  ;;  %v3296_v54 = vld [vmem:[#allocation4 + $0x2e0] ss:$8 sps:$4 sm:$0xff]  }
  0xb7   :  { %755 = vmatmul.mubr.bf16.gmra.mrb[32].mxu0 %v214_v55  ;;  %v193_v55 = vpack.c.bf16 %v77_v51, %v73_v50  ;;  %v3295_v50 = vld [vmem:[#allocation4 + $0x250] ss:$8 sps:$4 sm:$0xff]  }
  0xb8   :  { %764 = vmatprep.mubr.bf16.mxu0 %v219_v56  ;;  %v3293_v56 = vld [vmem:[#allocation4 + $0x240] ss:$8 sps:$4 sm:$0xff]   ;;  %v153_v51 = vld [vmem:[#allocation2 + $0x318] sm:$0xff] }
  0xb9   :  { %2711 = vmatpush3.bf16.msra.mxu1 %v3293_v56  ;;  %v3297_v56 = vld [vmem:[#allocation4 + $0x260] ss:$8 sps:$4 sm:$0xff]  }
  0xba   :  { %2712 = vmatprep.subr.bf16.mxu1 %v3294_v57  ;;  %v3298_v57 = vld [vmem:[#allocation4 + $0x2f0] ss:$8 sps:$4 sm:$0xff]  }
  0xbd   :  { %2713 = vmatpush3.bf16.msra.mxu1 %v3295_v50 }
  0xbe   :  { %2714 = vmatprep.subr.bf16.mxu1 %v3296_v54 }
  0xbf   :  { %765 = vmatmul.mubr.bf16.gmra.mrb[36].mxu0 %v218_v61  ;;  %v85_v61 = vld [vmem:[#allocation2 + $0xf8] sm:$0xff] }
  0xc0   :  { %774 = vmatprep.mubr.bf16.mxu0 %v223_v62  ;;  %v192_v62 = vpack.c.bf16 %v76_v59, %v72_v58  ;;  %v197_v63 = vpack.c.bf16 %v85_v61, %v81_v60  ;;  %v152_v58 = vld [vmem:[#allocation2 + $0x310] sm:$0xff]  ;;  %v161_v61 = vld [vmem:[#allocation2 + $0x358] sm:$0xff] }
  0xc1   :  { %2715 = vmatpush3.bf16.msra.mxu1 %v3297_v56  ;;  %v156_v59 = vld [vmem:[#allocation2 + $0x330] sm:$0xff] }
  0xc2   :  { %v3299_v60 = vld [vmem:[#allocation4 + $0x270] ss:$8 sps:$4 sm:$0xff]   ;;  %2716 = vmatprep.subr.bf16.mxu1 %v3298_v57 }
  0xc3   :  { %v3303_v57 = vld [vmem:[#allocation4 + $0x330] ss:$8 sps:$4 sm:$0xff]  }
  0xc5   :  { %2717 = vmatpush3.bf16.msra.mxu1 %v3299_v60 }
  0xc7   :  { %775 = vmatmul.mubr.bf16.gmra.mrb[40].mxu0 %v222_v3  ;;  %v93_v3 = vld [vmem:[#allocation2 + $0x138] sm:$0xff] }
  0xc8   :  { %784 = vmatprep.mubr.bf16.mxu0 %v227_v4  ;;  %v196_v4 = vpack.c.bf16 %v84_v1, %v80_v0  ;;  %v201_v5 = vpack.c.bf16 %v93_v3, %v89_v2  ;;  %v160_v1 = vld [vmem:[#allocation2 + $0x350] sm:$0xff]  ;;  %v169_v3 = vld [vmem:[#allocation2 + $0x398] sm:$0xff] }
  0xc9   :  { %v164_v2 = vld [vmem:[#allocation2 + $0x370] sm:$0xff] }
  0xcf   :  { %785 = vmatmul.mubr.bf16.gmra.mrb[44].mxu0 %v226_v9  ;;  %v101_v9 = vld [vmem:[#allocation2 + $0x178] sm:$0xff] }
  0xd0   :  { %794 = vmatprep.mubr.bf16.mxu0 %v231_v10  ;;  %v200_v10 = vpack.c.bf16 %v92_v7, %v88_v6  ;;  %v205_v11 = vpack.c.bf16 %v101_v9, %v97_v8  ;;  %v168_v7 = vld [vmem:[#allocation2 + $0x390] sm:$0xff]  ;;  %v177_v9 = vld [vmem:[#allocation2 + $0x3d8] sm:$0xff] }
  0xd1   :  { %v172_v8 = vld [vmem:[#allocation2 + $0x3b0] sm:$0xff] }
  0xd7   :  { %795 = vmatmul.mubr.bf16.gmra.mrb[48].mxu0 %v230_v15  ;;  %v109_v15 = vld [vmem:[#allocation2 + $0x1b8] sm:$0xff] }
  0xd8   :  { %804 = vmatprep.mubr.bf16.mxu0 %v235_v16  ;;  %v204_v16 = vpack.c.bf16 %v100_v13, %v96_v12  ;;  %v209_v17 = vpack.c.bf16 %v109_v15, %v105_v14  ;;  %v176_v13 = vld [vmem:[#allocation2 + $0x3d0] sm:$0xff] }
  0xd9   :  { %v180_v14 = vld [vmem:[#allocation2 + $0x3f0] sm:$0xff] }
  0xda   :  { %v244_v15 = vpack.c.bf16 %v180_v14, %v176_v13 }
  0xdf   :  { %805 = vmatmul.mubr.bf16.gmra.mrb[52].mxu0 %v234_v21  ;;  %v117_v21 = vld [vmem:[#allocation2 + $0x1f8] sm:$0xff] }
  0xe0   :  { %814 = vmatprep.mubr.bf16.mxu0 %v239_v22  ;;  %v208_v22 = vpack.c.bf16 %v108_v19, %v104_v18  ;;  %v213_v23 = vpack.c.bf16 %v117_v21, %v113_v20  ;;  %v310_v19 = vld [vmem:[#allocation6] ss:$8 sm:$0x3] }
  0xe7   :  { %815 = vmatmul.mubr.bf16.gmra.mrb[56].mxu0 %v238_v27  ;;  %v125_v27 = vld [vmem:[#allocation2 + $0x238] sm:$0xff] }
  0xe8   :  { %824 = vmatprep.mubr.bf16.mxu0 %v243_v28  ;;  %v212_v28 = vpack.c.bf16 %v116_v25, %v112_v24  ;;  %v217_v29 = vpack.c.bf16 %v125_v27, %v121_v26 }
  0xef   :  { %825 = vmatmul.mubr.bf16.gmra.mrb[60].mxu0 %v242_v33  ;;  %v133_v33 = vld [vmem:[#allocation2 + $0x278] sm:$0xff] }
  0xf0   :  { %867 = vmatprep.mubr.bf16.mxu0 %v185_v34  ;;  %v216_v34 = vpack.c.bf16 %v124_v31, %v120_v30  ;;  %v221_v35 = vpack.c.bf16 %v133_v33, %v129_v32  ;;  %v3300_v30 = vld [vmem:[#allocation4 + $0x300] ss:$8 sps:$4 sm:$0xff]  }
  0xf1   :  { %2893 = vmatprep.subr.bf16.mxu1 %v3300_v30 }
  0xf7   :  { %868 = vmatmul.mubr.bf16.vlgmr.msra.gmra.mrb[0].mxu0 %v184_v43  ;;  %v140_v43 = vld [vmem:[#allocation2 + $0x2b0] sm:$0xff] }
  0xf8   :  { %877 = vmatprep.mubr.bf16.mxu0 %v189_v45  ;;  %v149_v45 = vld [vmem:[#allocation2 + $0x2f8] sm:$0xff]  ;;  %v224_v46 = vpack.c.bf16 %v140_v43, %v136_v42 }
  0xf9   :  { %v229_v47 = vpack.c.bf16 %v149_v45, %v145_v44 }
  0xff   :  { %878 = vmatmul.mubr.bf16.gmra.mrb[4].mxu0 %v188_v53  ;;  %v228_v53 = vpack.c.bf16 %v148_v49, %v144_v48  ;;  %v3302_v49 = vld [vmem:[#allocation4 + $0x320] ss:$8 sps:$4 sm:$0xff]  }
 0x100   :  { %887 = vmatprep.mubr.bf16.mxu0 %v193_v55  ;;  %v233_v55 = vpack.c.bf16 %v157_v52, %v153_v51 }
 0x107   :  { %888 = vmatmul.mubr.bf16.gmra.mrb[8].mxu0 %v192_v62  ;;  %v165_v62 = vld [vmem:[#allocation2 + $0x378] sm:$0xff] }
 0x108   :  { %897 = vmatprep.mubr.bf16.mxu0 %v197_v63  ;;  %v232_v63 = vpack.c.bf16 %v156_v59, %v152_v58  ;;  %v237_v0 = vpack.c.bf16 %v165_v62, %v161_v61 }
 0x10f   :  { %898 = vmatmul.mubr.bf16.gmra.mrb[12].mxu0 %v196_v4  ;;  %v173_v4 = vld [vmem:[#allocation2 + $0x3b8] sm:$0xff] }
 0x110   :  { %907 = vmatprep.mubr.bf16.mxu0 %v201_v5  ;;  %v236_v5 = vpack.c.bf16 %v164_v2, %v160_v1  ;;  %v241_v6 = vpack.c.bf16 %v173_v4, %v169_v3 }
 0x117   :  { %908 = vmatmul.mubr.bf16.gmra.mrb[16].mxu0 %v200_v10  ;;  %v181_v10 = vld [vmem:[#allocation2 + $0x3f8] sm:$0xff] }
 0x118   :  { %917 = vmatprep.mubr.bf16.mxu0 %v205_v11  ;;  %v240_v11 = vpack.c.bf16 %v172_v8, %v168_v7  ;;  %v245_v12 = vpack.c.bf16 %v181_v10, %v177_v9 }
 0x11f   :  { %918 = vmatmul.mubr.bf16.gmra.mrb[20].mxu0 %v204_v16  ;;  %v312_v16 = vlaneseq }
 0x120   :  { %927 = vmatprep.mubr.bf16.mxu0 %v209_v17 }
 0x121   :  { %v313_v17 = vshrl.u32 %v312_v16, 7 }
 0x123   :  { %v314_v18 = vsub.s32 0, %v313_v17  ;;  %v318_v20 = vsub.s32 1, %v313_v17 }
 0x125   :  { %v3448_v21 = vrot.slane %v310_v19, %v314_v18 }
 0x127   :  { %928 = vmatmul.mubr.bf16.gmra.mrb[24].mxu0 %v208_v22  ;;  %v3450_v22 = vrot.slane %v310_v19, %v318_v20 }
 0x128   :  { %937 = vmatprep.mubr.bf16.mxu0 %v213_v23 }
 0x12f   :  { %938 = vmatmul.mubr.bf16.gmra.mrb[28].mxu0 %v212_v28 }
 0x130   :  { %947 = vmatprep.mubr.bf16.mxu0 %v217_v29 }
 0x137   :  { %948 = vmatmul.mubr.bf16.gmra.mrb[32].mxu0 %v216_v34 }
 0x138   :  { %957 = vmatprep.mubr.bf16.mxu0 %v221_v35 }
 0x13f   :  { %958 = vmatmul.mubr.bf16.gmra.mrb[36].mxu0 %v220_v40 }
 0x140   :  { %967 = vmatprep.mubr.bf16.mxu0 %v225_v41  ;;  %v3301_v41 = vld [vmem:[#allocation4 + $0x310] ss:$8 sps:$4 sm:$0xff]  }
 0x147   :  { %968 = vmatmul.mubr.bf16.gmra.mrb[40].mxu0 %v224_v46 }
 0x148   :  { %977 = vmatprep.mubr.bf16.mxu0 %v229_v47 }
 0x14f   :  { %978 = vmatmul.mubr.bf16.gmra.mrb[44].mxu0 %v228_v53 }
 0x150   :  { %987 = vmatprep.mubr.bf16.mxu0 %v233_v55 }
 0x157   :  { %988 = vmatmul.mubr.bf16.gmra.mrb[48].mxu0 %v232_v63 }
 0x158   :  { %997 = vmatprep.mubr.bf16.mxu0 %v237_v0 }
 0x15f   :  { %998 = vmatmul.mubr.bf16.gmra.mrb[52].mxu0 %v236_v5 }
 0x160   :  { %1007 = vmatprep.mubr.bf16.mxu0 %v241_v6 }
 0x167   :  { %1008 = vmatmul.mubr.bf16.gmra.mrb[56].mxu0 %v240_v11 }
 0x168   :  { %1017 = vmatprep.mubr.bf16.mxu0 %v245_v12 }
 0x16f   :  { %1018 = vmatmul.mubr.bf16.gmra.mrb[60].mxu0 %v244_v15 }
 0x1ca   :  { %v869_v23 = vpop.f32.mrb[0].mxu0 }
 0x1cb   :  { %v3053_v24 = vadd.f32 %v869_v23, %v3448_v21  ;;  %v871_v25 = vpop.f32.mrb[1].mxu0 }
 0x1cc   :  { %v3054_v26 = vadd.f32 %v871_v25, %v3450_v22  ;;  %v873_v27 = vpop.f32.mrb[2].mxu0 }
 0x1cd   :  { %v3055_v28 = vadd.f32 %v873_v27, %v3448_v21  ;;  %v875_v29 = vpop.f32.mrb[3].mxu0  ;;  %v1028_v32 = vmax.f32 %v3053_v24, 0.0 }
 0x1ce   :  { %v3056_v31 = vadd.f32 %v875_v29, %v3450_v22  ;;  %v1029_v34 = vmax.f32 %v3054_v26, 0.0 }
 0x1cf   :  { %v1030_v33 = vmax.f32 %v3055_v28, 0.0 }
 0x1d0   :  { %v1031_v35 = vmax.f32 %v3056_v31, 0.0 }
 0x1d1   :  { %v1092_v36 = vpack.c.bf16 %v1030_v33, %v1028_v32 }
 0x1d2   :  { %v879_v37 = vpop.f32.mrb[4].mxu0  ;;  %v1093_v38 = vpack.c.bf16 %v1031_v35, %v1029_v34 }
 0x1d3   :  { %v3057_v39 = vadd.f32 %v879_v37, %v3448_v21  ;;  %v881_v40 = vpop.f32.mrb[5].mxu0 }
 0x1d4   :  { %v3058_v42 = vadd.f32 %v881_v40, %v3450_v22  ;;  %v883_v43 = vpop.f32.mrb[6].mxu0  ;;  %1285 = vmatprep.mubr.bf16.mxu1 %v1093_v38 }
 0x1d5   :  { %v3059_v44 = vadd.f32 %v883_v43, %v3448_v21  ;;  %v885_v45 = vpop.f32.mrb[7].mxu0  ;;  %1286 = vmatmul.mubr.bf16.vlgmr.msra.gmra.mrb[0].mxu1 %v1092_v36  ;;  %v1032_v47 = vmax.f32 %v3057_v39, 0.0 }
 0x1d6   :  { %v3060_v46 = vadd.f32 %v885_v45, %v3450_v22  ;;  %2894 = vmatpush3.bf16.msra.mxu1 %v3300_v30  ;;  %v1033_v50 = vmax.f32 %v3058_v42, 0.0 }
 0x1d7   :  { %v1034_v48 = vmax.f32 %v3059_v44, 0.0  ;;  %2895 = vmatprep.subr.bf16.mxu1 %v3301_v41 }
 0x1d8   :  { %v1035_v51 = vmax.f32 %v3060_v46, 0.0 }
 0x1d9   :  { %v1094_v52 = vpack.c.bf16 %v1034_v48, %v1032_v47 }
 0x1da   :  { %v1095_v53 = vpack.c.bf16 %v1035_v51, %v1033_v50  ;;  %v889_v54 = vpop.f32.mrb[8].mxu0  ;;  %2896 = vmatpush3.bf16.msra.mxu1 %v3301_v41 }
 0x1db   :  { %v3061_v55 = vadd.f32 %v889_v54, %v3448_v21  ;;  %v891_v56 = vpop.f32.mrb[9].mxu0  ;;  %2897 = vmatprep.subr.bf16.mxu1 %v3302_v49 }
 0x1dc   :  { %v3062_v58 = vadd.f32 %v891_v56, %v3450_v22  ;;  %v893_v59 = vpop.f32.mrb[10].mxu0  ;;  %1293 = vmatprep.mubr.bf16.mxu1 %v1095_v53 }
 0x1dd   :  { %v3063_v60 = vadd.f32 %v893_v59, %v3448_v21  ;;  %v895_v61 = vpop.f32.mrb[11].mxu0  ;;  %1294 = vmatmul.mubr.bf16.gmra.mrb[4].mxu1 %v1094_v52  ;;  %v1036_v63 = vmax.f32 %v3061_v55, 0.0 }
 0x1de   :  { %v3064_v62 = vadd.f32 %v895_v61, %v3450_v22  ;;  %2898 = vmatpush3.bf16.msra.mxu1 %v3302_v49  ;;  %v1037_v1 = vmax.f32 %v3062_v58, 0.0 }
 0x1df   :  { %v1038_v0 = vmax.f32 %v3063_v60, 0.0  ;;  %2899 = vmatprep.subr.bf16.mxu1 %v3303_v57 }
 0x1e0   :  { %v1039_v2 = vmax.f32 %v3064_v62, 0.0 }
 0x1e1   :  { %v1096_v3 = vpack.c.bf16 %v1038_v0, %v1036_v63 }
 0x1e2   :  { %v1097_v4 = vpack.c.bf16 %v1039_v2, %v1037_v1  ;;  %v899_v5 = vpop.f32.mrb[12].mxu0  ;;  %2900 = vmatpush3.bf16.msra.mxu1 %v3303_v57 }
 0x1e3   :  { %v3065_v6 = vadd.f32 %v899_v5, %v3448_v21  ;;  %v901_v7 = vpop.f32.mrb[13].mxu0 }
 0x1e4   :  { %v3066_v8 = vadd.f32 %v901_v7, %v3450_v22  ;;  %v903_v9 = vpop.f32.mrb[14].mxu0  ;;  %1301 = vmatprep.mubr.bf16.mxu1 %v1097_v4 }
 0x1e5   :  { %v3067_v10 = vadd.f32 %v903_v9, %v3448_v21  ;;  %v905_v11 = vpop.f32.mrb[15].mxu0  ;;  %1302 = vmatmul.mubr.bf16.gmra.mrb[8].mxu1 %v1096_v3  ;;  %v1040_v13 = vmax.f32 %v3065_v6, 0.0 }
 0x1e6   :  { %v3068_v12 = vadd.f32 %v905_v11, %v3450_v22  ;;  %v1041_v15 = vmax.f32 %v3066_v8, 0.0 }
 0x1e7   :  { %v1042_v14 = vmax.f32 %v3067_v10, 0.0 }
 0x1e8   :  { %v1043_v16 = vmax.f32 %v3068_v12, 0.0 }
 0x1e9   :  { %v1098_v17 = vpack.c.bf16 %v1042_v14, %v1040_v13 }
 0x1ea   :  { %v1099_v18 = vpack.c.bf16 %v1043_v16, %v1041_v15  ;;  %v909_v19 = vpop.f32.mrb[16].mxu0 }
 0x1eb   :  { %v3069_v20 = vadd.f32 %v909_v19, %v3448_v21  ;;  %v911_v23 = vpop.f32.mrb[17].mxu0 }
 0x1ec   :  { %v3070_v24 = vadd.f32 %v911_v23, %v3450_v22  ;;  %v913_v25 = vpop.f32.mrb[18].mxu0  ;;  %1309 = vmatprep.mubr.bf16.mxu1 %v1099_v18 }
 0x1ed   :  { %v3071_v26 = vadd.f32 %v913_v25, %v3448_v21  ;;  %v915_v27 = vpop.f32.mrb[19].mxu0  ;;  %1310 = vmatmul.mubr.bf16.gmra.mrb[12].mxu1 %v1098_v17  ;;  %v1044_v29 = vmax.f32 %v3069_v20, 0.0 }
 0x1ee   :  { %v3072_v28 = vadd.f32 %v915_v27, %v3450_v22  ;;  %v1045_v31 = vmax.f32 %v3070_v24, 0.0 }
 0x1ef   :  { %v1046_v30 = vmax.f32 %v3071_v26, 0.0 }
 0x1f0   :  { %v1047_v32 = vmax.f32 %v3072_v28, 0.0 }
 0x1f1   :  { %v1100_v33 = vpack.c.bf16 %v1046_v30, %v1044_v29 }
 0x1f2   :  { %v1101_v34 = vpack.c.bf16 %v1047_v32, %v1045_v31  ;;  %v919_v35 = vpop.f32.mrb[20].mxu0 }
 0x1f3   :  { %v3073_v36 = vadd.f32 %v919_v35, %v3448_v21  ;;  %v921_v37 = vpop.f32.mrb[21].mxu0 }
 0x1f4   :  { %v3074_v38 = vadd.f32 %v921_v37, %v3450_v22  ;;  %v923_v39 = vpop.f32.mrb[22].mxu0  ;;  %1317 = vmatprep.mubr.bf16.mxu1 %v1101_v34 }
 0x1f5   :  { %v3075_v40 = vadd.f32 %v923_v39, %v3448_v21  ;;  %v925_v41 = vpop.f32.mrb[23].mxu0  ;;  %1318 = vmatmul.mubr.bf16.gmra.mrb[16].mxu1 %v1100_v33  ;;  %v1048_v43 = vmax.f32 %v3073_v36, 0.0 }
 0x1f6   :  { %v3076_v42 = vadd.f32 %v925_v41, %v3450_v22  ;;  %v1049_v45 = vmax.f32 %v3074_v38, 0.0 }
 0x1f7   :  { %v1050_v44 = vmax.f32 %v3075_v40, 0.0 }
 0x1f8   :  { %v1051_v46 = vmax.f32 %v3076_v42, 0.0 }
 0x1f9   :  { %v1102_v47 = vpack.c.bf16 %v1050_v44, %v1048_v43 }
 0x1fa   :  { %v1103_v48 = vpack.c.bf16 %v1051_v46, %v1049_v45  ;;  %v929_v49 = vpop.f32.mrb[24].mxu0 }
 0x1fb   :  { %v3077_v50 = vadd.f32 %v929_v49, %v3448_v21  ;;  %v931_v51 = vpop.f32.mrb[25].mxu0 }
 0x1fc   :  { %v3078_v52 = vadd.f32 %v931_v51, %v3450_v22  ;;  %v933_v53 = vpop.f32.mrb[26].mxu0  ;;  %1325 = vmatprep.mubr.bf16.mxu1 %v1103_v48 }
 0x1fd   :  { %v3079_v54 = vadd.f32 %v933_v53, %v3448_v21  ;;  %v935_v55 = vpop.f32.mrb[27].mxu0  ;;  %1326 = vmatmul.mubr.bf16.gmra.mrb[20].mxu1 %v1102_v47  ;;  %v1052_v57 = vmax.f32 %v3077_v50, 0.0 }
 0x1fe   :  { %v3080_v56 = vadd.f32 %v935_v55, %v3450_v22  ;;  %v1053_v59 = vmax.f32 %v3078_v52, 0.0 }
 0x1ff   :  { %v1054_v58 = vmax.f32 %v3079_v54, 0.0 }
 0x200   :  { %v1055_v60 = vmax.f32 %v3080_v56, 0.0 }
 0x201   :  { %v1104_v61 = vpack.c.bf16 %v1054_v58, %v1052_v57 }
 0x202   :  { %v1105_v62 = vpack.c.bf16 %v1055_v60, %v1053_v59  ;;  %v939_v63 = vpop.f32.mrb[28].mxu0 }
 0x203   :  { %v3081_v0 = vadd.f32 %v939_v63, %v3448_v21  ;;  %v941_v1 = vpop.f32.mrb[29].mxu0 }
 0x204   :  { %v3082_v2 = vadd.f32 %v941_v1, %v3450_v22  ;;  %v943_v3 = vpop.f32.mrb[30].mxu0  ;;  %1333 = vmatprep.mubr.bf16.mxu1 %v1105_v62 }
 0x205   :  { %v3083_v4 = vadd.f32 %v943_v3, %v3448_v21  ;;  %v945_v5 = vpop.f32.mrb[31].mxu0  ;;  %1334 = vmatmul.mubr.bf16.gmra.mrb[24].mxu1 %v1104_v61  ;;  %v1056_v7 = vmax.f32 %v3081_v0, 0.0 }
 0x206   :  { %v3084_v6 = vadd.f32 %v945_v5, %v3450_v22  ;;  %v1057_v9 = vmax.f32 %v3082_v2, 0.0 }
 0x207   :  { %v1058_v8 = vmax.f32 %v3083_v4, 0.0 }
 0x208   :  { %v1059_v10 = vmax.f32 %v3084_v6, 0.0 }
 0x209   :  { %v1106_v11 = vpack.c.bf16 %v1058_v8, %v1056_v7  ;;  %v3304_v8 = vld [vmem:[#allocation4 + $0x340] ss:$8 sps:$4 sm:$0xff]  }
 0x20a   :  { %v1107_v12 = vpack.c.bf16 %v1059_v10, %v1057_v9  ;;  %v949_v13 = vpop.f32.mrb[32].mxu0  ;;  %2901 = vmatprep.subr.bf16.mxu1 %v3304_v8 }
 0x20b   :  { %v3085_v14 = vadd.f32 %v949_v13, %v3448_v21  ;;  %v951_v15 = vpop.f32.mrb[33].mxu0  ;;  %2902 = vmatpush3.bf16.msra.mxu1 %v3304_v8 }
 0x20c   :  { %v3086_v16 = vadd.f32 %v951_v15, %v3450_v22  ;;  %v953_v17 = vpop.f32.mrb[34].mxu0  ;;  %1341 = vmatprep.mubr.bf16.mxu1 %v1107_v12 }
 0x20d   :  { %v3087_v18 = vadd.f32 %v953_v17, %v3448_v21  ;;  %v955_v19 = vpop.f32.mrb[35].mxu0  ;;  %1342 = vmatmul.mubr.bf16.gmra.mrb[28].mxu1 %v1106_v11  ;;  %v1060_v23 = vmax.f32 %v3085_v14, 0.0 }
 0x20e   :  { %v3088_v20 = vadd.f32 %v955_v19, %v3450_v22  ;;  %v1061_v25 = vmax.f32 %v3086_v16, 0.0  ;;  %v3305_v16 = vld [vmem:[#allocation4 + $0x350] ss:$8 sps:$4 sm:$0xff]  }
 0x20f   :  { %v1062_v24 = vmax.f32 %v3087_v18, 0.0  ;;  %2903 = vmatprep.subr.bf16.mxu1 %v3305_v16 }
 0x210   :  { %v1063_v26 = vmax.f32 %v3088_v20, 0.0  ;;  %2904 = vmatpush3.bf16.msra.mxu1 %v3305_v16 }
 0x211   :  { %v1108_v27 = vpack.c.bf16 %v1062_v24, %v1060_v23 }
 0x212   :  { %v1109_v28 = vpack.c.bf16 %v1063_v26, %v1061_v25  ;;  %v959_v29 = vpop.f32.mrb[36].mxu0  ;;  %v3306_v26 = vld [vmem:[#allocation4 + $0x360] ss:$8 sps:$4 sm:$0xff]  }
 0x213   :  { %v3089_v30 = vadd.f32 %v959_v29, %v3448_v21  ;;  %v961_v31 = vpop.f32.mrb[37].mxu0  ;;  %2905 = vmatprep.subr.bf16.mxu1 %v3306_v26 }
 0x214   :  { %v3090_v32 = vadd.f32 %v961_v31, %v3450_v22  ;;  %v963_v33 = vpop.f32.mrb[38].mxu0  ;;  %1349 = vmatprep.mubr.bf16.mxu1 %v1109_v28  ;;  %2906 = vmatpush3.bf16.msra.mxu1 %v3306_v26 }
 0x215   :  { %v3091_v34 = vadd.f32 %v963_v33, %v3448_v21  ;;  %v965_v35 = vpop.f32.mrb[39].mxu0  ;;  %1350 = vmatmul.mubr.bf16.gmra.mrb[32].mxu1 %v1108_v27  ;;  %v1064_v37 = vmax.f32 %v3089_v30, 0.0 }
 0x216   :  { %v3092_v36 = vadd.f32 %v965_v35, %v3450_v22  ;;  %v1065_v39 = vmax.f32 %v3090_v32, 0.0 }
 0x217   :  { %v1066_v38 = vmax.f32 %v3091_v34, 0.0  ;;  %v3307_v34 = vld [vmem:[#allocation4 + $0x370] ss:$8 sps:$4 sm:$0xff]  }
 0x218   :  { %v1067_v40 = vmax.f32 %v3092_v36, 0.0  ;;  %2907 = vmatprep.subr.bf16.mxu1 %v3307_v34 }
 0x219   :  { %v1110_v41 = vpack.c.bf16 %v1066_v38, %v1064_v37  ;;  %2908 = vmatpush3.bf16.msra.mxu1 %v3307_v34 }
 0x21a   :  { %v1111_v42 = vpack.c.bf16 %v1067_v40, %v1065_v39  ;;  %v969_v43 = vpop.f32.mrb[40].mxu0 }
 0x21b   :  { %v3093_v44 = vadd.f32 %v969_v43, %v3448_v21  ;;  %v971_v45 = vpop.f32.mrb[41].mxu0 }
 0x21c   :  { %v3094_v46 = vadd.f32 %v971_v45, %v3450_v22  ;;  %v973_v47 = vpop.f32.mrb[42].mxu0  ;;  %1357 = vmatprep.mubr.bf16.mxu1 %v1111_v42 }
 0x21d   :  { %v3095_v48 = vadd.f32 %v973_v47, %v3448_v21  ;;  %v975_v49 = vpop.f32.mrb[43].mxu0  ;;  %1358 = vmatmul.mubr.bf16.gmra.mrb[36].mxu1 %v1110_v41  ;;  %v1068_v51 = vmax.f32 %v3093_v44, 0.0 }
 0x21e   :  { %v3096_v50 = vadd.f32 %v975_v49, %v3450_v22  ;;  %v1069_v53 = vmax.f32 %v3094_v46, 0.0 }
 0x21f   :  { %v1070_v52 = vmax.f32 %v3095_v48, 0.0 }
 0x220   :  { %v1071_v54 = vmax.f32 %v3096_v50, 0.0 }
 0x221   :  { %v1112_v55 = vpack.c.bf16 %v1070_v52, %v1068_v51 }
 0x222   :  { %v1113_v56 = vpack.c.bf16 %v1071_v54, %v1069_v53  ;;  %v979_v57 = vpop.f32.mrb[44].mxu0 }
 0x223   :  { %v3097_v58 = vadd.f32 %v979_v57, %v3448_v21  ;;  %v981_v59 = vpop.f32.mrb[45].mxu0 }
 0x224   :  { %v3098_v60 = vadd.f32 %v981_v59, %v3450_v22  ;;  %v983_v61 = vpop.f32.mrb[46].mxu0  ;;  %1365 = vmatprep.mubr.bf16.mxu1 %v1113_v56 }
 0x225   :  { %v3099_v62 = vadd.f32 %v983_v61, %v3448_v21  ;;  %v985_v63 = vpop.f32.mrb[47].mxu0  ;;  %1366 = vmatmul.mubr.bf16.gmra.mrb[40].mxu1 %v1112_v55  ;;  %v1072_v1 = vmax.f32 %v3097_v58, 0.0 }
 0x226   :  { %v3100_v0 = vadd.f32 %v985_v63, %v3450_v22  ;;  %v1073_v3 = vmax.f32 %v3098_v60, 0.0 }
 0x227   :  { %v1074_v2 = vmax.f32 %v3099_v62, 0.0 }
 0x228   :  { %v1075_v4 = vmax.f32 %v3100_v0, 0.0 }
 0x229   :  { %v1114_v5 = vpack.c.bf16 %v1074_v2, %v1072_v1 }
 0x22a   :  { %v1115_v6 = vpack.c.bf16 %v1075_v4, %v1073_v3  ;;  %v989_v7 = vpop.f32.mrb[48].mxu0 }
 0x22b   :  { %v3101_v9 = vadd.f32 %v989_v7, %v3448_v21  ;;  %v991_v10 = vpop.f32.mrb[49].mxu0 }
 0x22c   :  { %v3102_v11 = vadd.f32 %v991_v10, %v3450_v22  ;;  %v993_v12 = vpop.f32.mrb[50].mxu0  ;;  %1373 = vmatprep.mubr.bf16.mxu1 %v1115_v6  ;;  %v3516_v6 = vld [vmem:[#allocation6 + $0x1] ss:$0 sm:$0xff] }
 0x22d   :  { %v3103_v13 = vadd.f32 %v993_v12, %v3448_v21  ;;  %v995_v14 = vpop.f32.mrb[51].mxu0  ;;  %1374 = vmatmul.mubr.bf16.gmra.mrb[44].mxu1 %v1114_v5  ;;  %v1076_v17 = vmax.f32 %v3101_v9, 0.0  ;;  %v3308_v12 = vld [vmem:[#allocation4 + $0x380] ss:$8 sps:$4 sm:$0xff]  }
 0x22e   :  { %v3104_v15 = vadd.f32 %v995_v14, %v3450_v22  ;;  %v1077_v19 = vmax.f32 %v3102_v11, 0.0  ;;  %2941 = vmatprep.subr.bf16.mxu1 %v3308_v12 }
 0x22f   :  { %v1078_v18 = vmax.f32 %v3103_v13, 0.0 }
 0x230   :  { %v1079_v20 = vmax.f32 %v3104_v15, 0.0 }
 0x231   :  { %v1116_v23 = vpack.c.bf16 %v1078_v18, %v1076_v17 }
 0x232   :  { %v1117_v24 = vpack.c.bf16 %v1079_v20, %v1077_v19  ;;  %v999_v25 = vpop.f32.mrb[52].mxu0 }
 0x233   :  { %v3105_v27 = vadd.f32 %v999_v25, %v3448_v21  ;;  %v1001_v28 = vpop.f32.mrb[53].mxu0 }
 0x234   :  { %v3106_v29 = vadd.f32 %v1001_v28, %v3450_v22  ;;  %v1003_v30 = vpop.f32.mrb[54].mxu0  ;;  %1381 = vmatprep.mubr.bf16.mxu1 %v1117_v24 }
 0x235   :  { %v3107_v31 = vadd.f32 %v1003_v30, %v3448_v21  ;;  %v1005_v32 = vpop.f32.mrb[55].mxu0  ;;  %1382 = vmatmul.mubr.bf16.gmra.mrb[48].mxu1 %v1116_v23  ;;  %v1080_v35 = vmax.f32 %v3105_v27, 0.0 }
 0x236   :  { %v3108_v33 = vadd.f32 %v1005_v32, %v3450_v22  ;;  %v1081_v37 = vmax.f32 %v3106_v29, 0.0 }
 0x237   :  { %v1082_v36 = vmax.f32 %v3107_v31, 0.0 }
 0x238   :  { %v1083_v38 = vmax.f32 %v3108_v33, 0.0  ;;  %v3309_v33 = vld [vmem:[#allocation4 + $0x390] ss:$8 sps:$4 sm:$0xff]  }
 0x239   :  { %v1118_v39 = vpack.c.bf16 %v1082_v36, %v1080_v35 }
 0x23a   :  { %v1119_v40 = vpack.c.bf16 %v1083_v38, %v1081_v37  ;;  %v1009_v41 = vpop.f32.mrb[56].mxu0 }
 0x23b   :  { %v3109_v42 = vadd.f32 %v1009_v41, %v3448_v21  ;;  %v1011_v43 = vpop.f32.mrb[57].mxu0 }
 0x23c   :  { %v3110_v44 = vadd.f32 %v1011_v43, %v3450_v22  ;;  %v1013_v45 = vpop.f32.mrb[58].mxu0  ;;  %1389 = vmatprep.mubr.bf16.mxu1 %v1119_v40 }
 0x23d   :  { %v3111_v46 = vadd.f32 %v1013_v45, %v3448_v21  ;;  %v1015_v47 = vpop.f32.mrb[59].mxu0  ;;  %1390 = vmatmul.mubr.bf16.gmra.mrb[52].mxu1 %v1118_v39  ;;  %v1084_v49 = vmax.f32 %v3109_v42, 0.0 }
 0x23e   :  { %v3112_v48 = vadd.f32 %v1015_v47, %v3450_v22  ;;  %v1085_v51 = vmax.f32 %v3110_v44, 0.0 }
 0x23f   :  { %v1086_v50 = vmax.f32 %v3111_v46, 0.0 }
 0x240   :  { %v1087_v52 = vmax.f32 %v3112_v48, 0.0 }
 0x241   :  { %v1120_v53 = vpack.c.bf16 %v1086_v50, %v1084_v49 }
 0x242   :  { %v1121_v54 = vpack.c.bf16 %v1087_v52, %v1085_v51  ;;  %v1019_v55 = vpop.f32.mrb[60].mxu0 }
 0x243   :  { %v3113_v56 = vadd.f32 %v1019_v55, %v3448_v21  ;;  %v1021_v57 = vpop.f32.mrb[61].mxu0 }
 0x244   :  { %v3114_v58 = vadd.f32 %v1021_v57, %v3450_v22  ;;  %v1023_v59 = vpop.f32.mrb[62].mxu0  ;;  %1397 = vmatprep.mubr.bf16.mxu1 %v1121_v54 }
 0x245   :  { %v3115_v60 = vadd.f32 %v1023_v59, %v3448_v21  ;;  %v1025_v61 = vpop.f32.mrb[63].mxu0  ;;  %1398 = vmatmul.mubr.bf16.gmra.mrb[56].mxu1 %v1120_v53  ;;  %v1088_v63 = vmax.f32 %v3113_v56, 0.0 }
 0x246   :  { %v3116_v62 = vadd.f32 %v1025_v61, %v3450_v22  ;;  %v1089_v1 = vmax.f32 %v3114_v58, 0.0 }
 0x247   :  { %v1090_v0 = vmax.f32 %v3115_v60, 0.0 }
 0x248   :  { %v1091_v2 = vmax.f32 %v3116_v62, 0.0 }
 0x249   :  { %v1122_v3 = vpack.c.bf16 %v1090_v0, %v1088_v63 }
 0x24a   :  { %v1123_v4 = vpack.c.bf16 %v1091_v2, %v1089_v1 }
 0x24c   :  { %1405 = vmatprep.mubr.bf16.mxu1 %v1123_v4 }
 0x24d   :  { %1406 = vmatmul.mubr.bf16.gmra.mrb[60].mxu1 %v1122_v3 }
 0x2a8   :  { %v2718_v5 = vpop.f32.mrb[0].mxu1 }
 0x2a9   :  { %v2719_v7 = vpop.f32.mrb[1].mxu1 }
 0x2aa   :  { %v2720_v8 = vadd.f32 %v2719_v7, %v2718_v5  ;;  %v2721_v9 = vpop.f32.mrb[2].mxu1 }
 0x2ab   :  { %v2722_v10 = vpop.f32.mrb[3].mxu1 }
 0x2ac   :  { %v1288_v21 = vadd.f32 %v2720_v8, %v3516_v6  ;;  %v2723_v11 = vadd.f32 %v2722_v10, %v2721_v9 }
 0x2ae   :  { %v1291_v22 = vadd.f32 %v2723_v11, %v3516_v6  ;;  %v1414_v13 = vmax.f32 %v1288_v21, 0.0 }
 0x2b0   :  { %v1415_v14 = vmax.f32 %v1291_v22, 0.0  ;;  %v2724_v15 = vpop.f32.mrb[4].mxu1 }
 0x2b1   :  { %v2725_v16 = vpop.f32.mrb[5].mxu1 }
 0x2b2   :  { %v2726_v17 = vadd.f32 %v2725_v16, %v2724_v15  ;;  %v2727_v18 = vpop.f32.mrb[6].mxu1  ;;  %v1446_v19 = vpack.c.bf16 %v1415_v14, %v1414_v13 }
 0x2b3   :  { %v2728_v20 = vpop.f32.mrb[7].mxu1 }
 0x2b4   :  { %v1296_v23 = vadd.f32 %v2726_v17, %v3516_v6  ;;  %v2729_v24 = vadd.f32 %v2728_v20, %v2727_v18  ;;  %2909 = vmatprep.mubr.bf16.mxu1 %v1446_v19 }
 0x2b6   :  { %v1299_v25 = vadd.f32 %v2729_v24, %v3516_v6  ;;  %v1416_v26 = vmax.f32 %v1296_v23, 0.0 }
 0x2b8   :  { %v1417_v27 = vmax.f32 %v1299_v25, 0.0  ;;  %v2730_v28 = vpop.f32.mrb[8].mxu1 }
 0x2b9   :  { %v2731_v29 = vpop.f32.mrb[9].mxu1 }
 0x2ba   :  { %v1447_v30 = vpack.c.bf16 %v1417_v27, %v1416_v26  ;;  %v2732_v31 = vadd.f32 %v2731_v29, %v2730_v28  ;;  %v2733_v32 = vpop.f32.mrb[10].mxu1 }
 0x2bb   :  { %v2734_v34 = vpop.f32.mrb[11].mxu1 }
 0x2bc   :  { %v1304_v35 = vadd.f32 %v2732_v31, %v3516_v6  ;;  %v2735_v36 = vadd.f32 %v2734_v34, %v2733_v32  ;;  %2910 = vmatmul.mubr.bf16.vlgmr.msra.gmra.mrb[64].mxu1 %v1447_v30 }
 0x2bd   :  { %2942 = vmatpush3.bf16.msra.mxu1 %v3308_v12 }
 0x2be   :  { %v1307_v37 = vadd.f32 %v2735_v36, %v3516_v6  ;;  %2943 = vmatprep.subr.bf16.mxu1 %v3309_v33  ;;  %v1418_v38 = vmax.f32 %v1304_v35, 0.0 }
 0x2c0   :  { %v1419_v39 = vmax.f32 %v1307_v37, 0.0  ;;  %v2736_v40 = vpop.f32.mrb[12].mxu1 }
 0x2c1   :  { %v2737_v41 = vpop.f32.mrb[13].mxu1  ;;  %2944 = vmatpush3.bf16.msra.mxu1 %v3309_v33 }
 0x2c2   :  { %v2738_v42 = vadd.f32 %v2737_v41, %v2736_v40  ;;  %v2739_v43 = vpop.f32.mrb[14].mxu1  ;;  %v1448_v44 = vpack.c.bf16 %v1419_v39, %v1418_v38 }
 0x2c3   :  { %v2740_v45 = vpop.f32.mrb[15].mxu1 }
 0x2c4   :  { %v1312_v46 = vadd.f32 %v2738_v42, %v3516_v6  ;;  %v2741_v47 = vadd.f32 %v2740_v45, %v2739_v43  ;;  %2913 = vmatprep.mubr.bf16.mxu1 %v1448_v44 }
 0x2c6   :  { %v1315_v48 = vadd.f32 %v2741_v47, %v3516_v6  ;;  %v1420_v49 = vmax.f32 %v1312_v46, 0.0 }
 0x2c8   :  { %v1421_v50 = vmax.f32 %v1315_v48, 0.0  ;;  %v2742_v51 = vpop.f32.mrb[16].mxu1 }
 0x2c9   :  { %v2743_v52 = vpop.f32.mrb[17].mxu1 }
 0x2ca   :  { %v2744_v53 = vadd.f32 %v2743_v52, %v2742_v51  ;;  %v2745_v54 = vpop.f32.mrb[18].mxu1  ;;  %v1449_v55 = vpack.c.bf16 %v1421_v50, %v1420_v49 }
 0x2cb   :  { %v2746_v56 = vpop.f32.mrb[19].mxu1 }
 0x2cc   :  { %v1320_v57 = vadd.f32 %v2744_v53, %v3516_v6  ;;  %v2747_v58 = vadd.f32 %v2746_v56, %v2745_v54  ;;  %2914 = vmatmul.mubr.bf16.gmra.mrb[68].mxu1 %v1449_v55 }
 0x2ce   :  { %v1323_v59 = vadd.f32 %v2747_v58, %v3516_v6  ;;  %v1422_v60 = vmax.f32 %v1320_v57, 0.0 }
 0x2d0   :  { %v1423_v61 = vmax.f32 %v1323_v59, 0.0  ;;  %v2748_v62 = vpop.f32.mrb[20].mxu1 }
 0x2d1   :  { %v2749_v63 = vpop.f32.mrb[21].mxu1 }
 0x2d2   :  { %v2750_v0 = vadd.f32 %v2749_v63, %v2748_v62  ;;  %v2751_v1 = vpop.f32.mrb[22].mxu1  ;;  %v1450_v2 = vpack.c.bf16 %v1423_v61, %v1422_v60 }
 0x2d3   :  { %v2752_v3 = vpop.f32.mrb[23].mxu1 }
 0x2d4   :  { %v1328_v4 = vadd.f32 %v2750_v0, %v3516_v6  ;;  %v2753_v5 = vadd.f32 %v2752_v3, %v2751_v1  ;;  %2917 = vmatprep.mubr.bf16.mxu1 %v1450_v2 }
 0x2d6   :  { %v1331_v7 = vadd.f32 %v2753_v5, %v3516_v6  ;;  %v1424_v8 = vmax.f32 %v1328_v4, 0.0 }
 0x2d8   :  { %v1425_v9 = vmax.f32 %v1331_v7, 0.0  ;;  %v2754_v10 = vpop.f32.mrb[24].mxu1 }
 0x2d9   :  { %v2755_v21 = vpop.f32.mrb[25].mxu1 }
 0x2da   :  { %v2756_v11 = vadd.f32 %v2755_v21, %v2754_v10  ;;  %v2757_v12 = vpop.f32.mrb[26].mxu1  ;;  %v1451_v22 = vpack.c.bf16 %v1425_v9, %v1424_v8 }
 0x2db   :  { %v2758_v13 = vpop.f32.mrb[27].mxu1 }
 0x2dc   :  { %v1336_v14 = vadd.f32 %v2756_v11, %v3516_v6  ;;  %v2759_v15 = vadd.f32 %v2758_v13, %v2757_v12  ;;  %2918 = vmatmul.mubr.bf16.gmra.mrb[72].mxu1 %v1451_v22 }
 0x2de   :  { %v1339_v16 = vadd.f32 %v2759_v15, %v3516_v6  ;;  %v1426_v17 = vmax.f32 %v1336_v14, 0.0 }
 0x2e0   :  { %v1427_v18 = vmax.f32 %v1339_v16, 0.0  ;;  %v2760_v19 = vpop.f32.mrb[28].mxu1 }
 0x2e1   :  { %v2761_v20 = vpop.f32.mrb[29].mxu1 }
 0x2e2   :  { %v2762_v23 = vadd.f32 %v2761_v20, %v2760_v19  ;;  %v2763_v24 = vpop.f32.mrb[30].mxu1  ;;  %v1452_v25 = vpack.c.bf16 %v1427_v18, %v1426_v17 }
 0x2e3   :  { %v2764_v26 = vpop.f32.mrb[31].mxu1 }
 0x2e4   :  { %v1344_v27 = vadd.f32 %v2762_v23, %v3516_v6  ;;  %v2765_v28 = vadd.f32 %v2764_v26, %v2763_v24  ;;  %2921 = vmatprep.mubr.bf16.mxu1 %v1452_v25  ;;  %v3310_v25 = vld [vmem:[#allocation4 + $0x3a0] ss:$8 sps:$4 sm:$0xff]  }
 0x2e5   :  { %2945 = vmatprep.subr.bf16.mxu1 %v3310_v25 }
 0x2e6   :  { %v1347_v29 = vadd.f32 %v2765_v28, %v3516_v6  ;;  %v1428_v30 = vmax.f32 %v1344_v27, 0.0  ;;  %2946 = vmatpush3.bf16.msra.mxu1 %v3310_v25 }
 0x2e8   :  { %v1429_v31 = vmax.f32 %v1347_v29, 0.0  ;;  %v2766_v32 = vpop.f32.mrb[32].mxu1 }
 0x2e9   :  { %v2767_v33 = vpop.f32.mrb[33].mxu1 }
 0x2ea   :  { %v2768_v34 = vadd.f32 %v2767_v33, %v2766_v32  ;;  %v2769_v35 = vpop.f32.mrb[34].mxu1  ;;  %v1453_v36 = vpack.c.bf16 %v1429_v31, %v1428_v30  ;;  %v3311_v33 = vld [vmem:[#allocation4 + $0x3b0] ss:$8 sps:$4 sm:$0xff]  }
 0x2eb   :  { %v2770_v37 = vpop.f32.mrb[35].mxu1  ;;  %2947 = vmatprep.subr.bf16.mxu1 %v3311_v33 }
 0x2ec   :  { %v1352_v38 = vadd.f32 %v2768_v34, %v3516_v6  ;;  %v2771_v39 = vadd.f32 %v2770_v37, %v2769_v35  ;;  %2922 = vmatmul.mubr.bf16.gmra.mrb[76].mxu1 %v1453_v36 }
 0x2ed   :  { %2948 = vmatpush3.bf16.msra.mxu1 %v3311_v33 }
 0x2ee   :  { %v1355_v40 = vadd.f32 %v2771_v39, %v3516_v6  ;;  %v1430_v41 = vmax.f32 %v1352_v38, 0.0 }
 0x2f0   :  { %v1431_v42 = vmax.f32 %v1355_v40, 0.0  ;;  %v2772_v43 = vpop.f32.mrb[36].mxu1 }
 0x2f1   :  { %v2773_v44 = vpop.f32.mrb[37].mxu1 }
 0x2f2   :  { %v2774_v45 = vadd.f32 %v2773_v44, %v2772_v43  ;;  %v2775_v46 = vpop.f32.mrb[38].mxu1  ;;  %v1454_v47 = vpack.c.bf16 %v1431_v42, %v1430_v41 }
 0x2f3   :  { %v2776_v48 = vpop.f32.mrb[39].mxu1 }
 0x2f4   :  { %v1360_v49 = vadd.f32 %v2774_v45, %v3516_v6  ;;  %v2777_v50 = vadd.f32 %v2776_v48, %v2775_v46  ;;  %2925 = vmatprep.mubr.bf16.mxu1 %v1454_v47 }
 0x2f6   :  { %v1363_v51 = vadd.f32 %v2777_v50, %v3516_v6  ;;  %v1432_v52 = vmax.f32 %v1360_v49, 0.0 }
 0x2f8   :  { %v1433_v53 = vmax.f32 %v1363_v51, 0.0  ;;  %v2778_v54 = vpop.f32.mrb[40].mxu1 }
 0x2f9   :  { %v2779_v55 = vpop.f32.mrb[41].mxu1 }
 0x2fa   :  { %v2780_v56 = vadd.f32 %v2779_v55, %v2778_v54  ;;  %v2781_v57 = vpop.f32.mrb[42].mxu1  ;;  %v1455_v58 = vpack.c.bf16 %v1433_v53, %v1432_v52 }
 0x2fb   :  { %v2782_v59 = vpop.f32.mrb[43].mxu1 }
 0x2fc   :  { %v1368_v60 = vadd.f32 %v2780_v56, %v3516_v6  ;;  %v2783_v61 = vadd.f32 %v2782_v59, %v2781_v57  ;;  %2926 = vmatmul.mubr.bf16.gmra.mrb[80].mxu1 %v1455_v58 }
 0x2fe   :  { %v1371_v62 = vadd.f32 %v2783_v61, %v3516_v6  ;;  %v1434_v63 = vmax.f32 %v1368_v60, 0.0  ;;  %v3550_v60 = vld [vmem:[#allocation6 + $0x2] ss:$0 sm:$0xff] }
 0x300   :  { %v1435_v0 = vmax.f32 %v1371_v62, 0.0  ;;  %v2784_v1 = vpop.f32.mrb[44].mxu1 }
 0x301   :  { %v2785_v2 = vpop.f32.mrb[45].mxu1 }
 0x302   :  { %v2786_v3 = vadd.f32 %v2785_v2, %v2784_v1  ;;  %v2787_v4 = vpop.f32.mrb[46].mxu1  ;;  %v1456_v5 = vpack.c.bf16 %v1435_v0, %v1434_v63 }
 0x303   :  { %v2788_v7 = vpop.f32.mrb[47].mxu1 }
 0x304   :  { %v1376_v8 = vadd.f32 %v2786_v3, %v3516_v6  ;;  %v2789_v9 = vadd.f32 %v2788_v7, %v2787_v4  ;;  %2929 = vmatprep.mubr.bf16.mxu1 %v1456_v5 }
 0x306   :  { %v1379_v10 = vadd.f32 %v2789_v9, %v3516_v6  ;;  %v1436_v21 = vmax.f32 %v1376_v8, 0.0 }
 0x308   :  { %v1437_v11 = vmax.f32 %v1379_v10, 0.0  ;;  %v2790_v12 = vpop.f32.mrb[48].mxu1 }
 0x309   :  { %v2791_v22 = vpop.f32.mrb[49].mxu1 }
 0x30a   :  { %v2792_v13 = vadd.f32 %v2791_v22, %v2790_v12  ;;  %v2793_v14 = vpop.f32.mrb[50].mxu1  ;;  %v1457_v15 = vpack.c.bf16 %v1437_v11, %v1436_v21 }
 0x30b   :  { %v2794_v16 = vpop.f32.mrb[51].mxu1 }
 0x30c   :  { %v1384_v17 = vadd.f32 %v2792_v13, %v3516_v6  ;;  %v2795_v18 = vadd.f32 %v2794_v16, %v2793_v14  ;;  %2930 = vmatmul.mubr.bf16.gmra.mrb[84].mxu1 %v1457_v15 }
 0x30e   :  { %v1387_v19 = vadd.f32 %v2795_v18, %v3516_v6  ;;  %v1438_v20 = vmax.f32 %v1384_v17, 0.0 }
 0x310   :  { %v1439_v23 = vmax.f32 %v1387_v19, 0.0  ;;  %v2796_v24 = vpop.f32.mrb[52].mxu1 }
 0x311   :  { %v2797_v26 = vpop.f32.mrb[53].mxu1 }
 0x312   :  { %v2798_v27 = vadd.f32 %v2797_v26, %v2796_v24  ;;  %v2799_v28 = vpop.f32.mrb[54].mxu1  ;;  %v1458_v29 = vpack.c.bf16 %v1439_v23, %v1438_v20 }
 0x313   :  { %v2800_v30 = vpop.f32.mrb[55].mxu1 }
 0x314   :  { %v1392_v31 = vadd.f32 %v2798_v27, %v3516_v6  ;;  %v2801_v32 = vadd.f32 %v2800_v30, %v2799_v28  ;;  %2933 = vmatprep.mubr.bf16.mxu1 %v1458_v29 }
 0x316   :  { %v1395_v34 = vadd.f32 %v2801_v32, %v3516_v6  ;;  %v1440_v35 = vmax.f32 %v1392_v31, 0.0 }
 0x318   :  { %v1441_v36 = vmax.f32 %v1395_v34, 0.0  ;;  %v2802_v37 = vpop.f32.mrb[56].mxu1 }
 0x319   :  { %v2803_v38 = vpop.f32.mrb[57].mxu1 }
 0x31a   :  { %v2804_v39 = vadd.f32 %v2803_v38, %v2802_v37  ;;  %v2805_v40 = vpop.f32.mrb[58].mxu1  ;;  %v1459_v41 = vpack.c.bf16 %v1441_v36, %v1440_v35 }
 0x31b   :  { %v2806_v42 = vpop.f32.mrb[59].mxu1 }
 0x31c   :  { %v1400_v43 = vadd.f32 %v2804_v39, %v3516_v6  ;;  %v2807_v44 = vadd.f32 %v2806_v42, %v2805_v40  ;;  %2934 = vmatmul.mubr.bf16.gmra.mrb[88].mxu1 %v1459_v41 }
 0x31e   :  { %v1403_v45 = vadd.f32 %v2807_v44, %v3516_v6  ;;  %v1442_v46 = vmax.f32 %v1400_v43, 0.0 }
 0x320   :  { %v1443_v47 = vmax.f32 %v1403_v45, 0.0  ;;  %v2808_v48 = vpop.f32.mrb[60].mxu1 }
 0x321   :  { %v2809_v49 = vpop.f32.mrb[61].mxu1 }
 0x322   :  { %v2810_v50 = vadd.f32 %v2809_v49, %v2808_v48  ;;  %v2811_v51 = vpop.f32.mrb[62].mxu1  ;;  %v1460_v52 = vpack.c.bf16 %v1443_v47, %v1442_v46 }
 0x323   :  { %v2812_v53 = vpop.f32.mrb[63].mxu1 }
 0x324   :  { %v1408_v54 = vadd.f32 %v2810_v50, %v3516_v6  ;;  %v2813_v55 = vadd.f32 %v2812_v53, %v2811_v51  ;;  %2937 = vmatprep.mubr.bf16.mxu1 %v1460_v52 }
 0x326   :  { %v1411_v56 = vadd.f32 %v2813_v55, %v3516_v6  ;;  %v1444_v57 = vmax.f32 %v1408_v54, 0.0 }
 0x328   :  { %v1445_v58 = vmax.f32 %v1411_v56, 0.0 }
 0x32a   :  { %v1461_v59 = vpack.c.bf16 %v1445_v58, %v1444_v57 }
 0x32c   :  { %2938 = vmatmul.mubr.bf16.gmra.mrb[92].mxu1 %v1461_v59 }
 0x38f   :  { %v2911_v61 = vpop.f32.mrb[64].mxu1 }
 0x390   :  { %v1570_v62 = vadd.f32 %v2911_v61, %v3550_v60  ;;  %v1561_v63 = vpop.f32.mrb[65].mxu1 }
 0x391   :  { %v1562_v0 = vadd.f32 %v1561_v63, %v3550_v60  ;;  %v2912_v1 = vpop.f32.mrb[66].mxu1 }
 0x392   :  { %v1573_v2 = vadd.f32 %v2912_v1, %v3550_v60  ;;  %v1564_v3 = vpop.f32.mrb[67].mxu1  ;;  %v1690_v5 = vmax.f32 %v1570_v62, 0.0 }
 0x393   :  { %v1565_v4 = vadd.f32 %v1564_v3, %v3550_v60  ;;  %v1688_v7 = vmax.f32 %v1562_v0, 0.0 }
 0x394   :  { %v1691_v6 = vmax.f32 %v1573_v2, 0.0 }
 0x395   :  { %v1689_v8 = vmax.f32 %v1565_v4, 0.0 }
 0x396   :  { %v1721_v9 = vpack.c.bf16 %v1691_v6, %v1690_v5 }
 0x397   :  { %v1720_v10 = vpack.c.bf16 %v1689_v8, %v1688_v7 }
 0x399   :  { %2949 = vmatprep.mubr.msk.bf16.mxu1 %vm1769_vm0, %v1720_v10 }
 0x39a   :  { %2950 = vmatmul.mubr.msk.bf16.vlgmr.msra.gmra.mrb[96].mxu1 %vm1769_vm0, %v1721_v9 }
 0x39f   :  { %v2915_v21 = vpop.f32.mrb[68].mxu1 }
 0x3a0   :  { %v1586_v11 = vadd.f32 %v2915_v21, %v3550_v60  ;;  %v1577_v12 = vpop.f32.mrb[69].mxu1 }
 0x3a1   :  { %v1578_v22 = vadd.f32 %v1577_v12, %v3550_v60  ;;  %v2916_v13 = vpop.f32.mrb[70].mxu1 }
 0x3a2   :  { %v1589_v14 = vadd.f32 %v2916_v13, %v3550_v60  ;;  %v1580_v15 = vpop.f32.mrb[71].mxu1  ;;  %v1694_v17 = vmax.f32 %v1586_v11, 0.0 }
 0x3a3   :  { %v1581_v16 = vadd.f32 %v1580_v15, %v3550_v60  ;;  %v1692_v19 = vmax.f32 %v1578_v22, 0.0 }
 0x3a4   :  { %v1695_v18 = vmax.f32 %v1589_v14, 0.0 }
 0x3a5   :  { %v1693_v20 = vmax.f32 %v1581_v16, 0.0  ;;  %v3312_v16 = vld [vmem:[#allocation4 + $0x3c0] ss:$8 sps:$4 sm:$0xff]  }
 0x3a6   :  { %v1723_v23 = vpack.c.bf16 %v1695_v18, %v1694_v17  ;;  %2981 = vmatprep.subr.bf16.mxu1 %v3312_v16 }
 0x3a7   :  { %v1722_v24 = vpack.c.bf16 %v1693_v20, %v1692_v19  ;;  %2982 = vmatpush3.bf16.msra.mxu1 %v3312_v16 }
 0x3a9   :  { %2953 = vmatprep.mubr.msk.bf16.mxu1 %vm1769_vm0, %v1722_v24 }
 0x3aa   :  { %2954 = vmatmul.mubr.msk.bf16.gmra.mrb[100].mxu1 %vm1769_vm0, %v1723_v23 }
 0x3af   :  { %v2919_v25 = vpop.f32.mrb[72].mxu1 }
 0x3b0   :  { %v1602_v26 = vadd.f32 %v2919_v25, %v3550_v60  ;;  %v1593_v27 = vpop.f32.mrb[73].mxu1 }
 0x3b1   :  { %v1594_v28 = vadd.f32 %v1593_v27, %v3550_v60  ;;  %v2920_v29 = vpop.f32.mrb[74].mxu1 }
 0x3b2   :  { %v1605_v30 = vadd.f32 %v2920_v29, %v3550_v60  ;;  %v1596_v31 = vpop.f32.mrb[75].mxu1  ;;  %v1698_v33 = vmax.f32 %v1602_v26, 0.0  ;;  %v3313_v26 = vld [vmem:[#allocation4 + $0x3d0] ss:$8 sps:$4 sm:$0xff]  }
 0x3b3   :  { %v1597_v32 = vadd.f32 %v1596_v31, %v3550_v60  ;;  %v1696_v35 = vmax.f32 %v1594_v28, 0.0  ;;  %2983 = vmatprep.subr.bf16.mxu1 %v3313_v26 }
 0x3b4   :  { %v1699_v34 = vmax.f32 %v1605_v30, 0.0  ;;  %2984 = vmatpush3.bf16.msra.mxu1 %v3313_v26 }
 0x3b5   :  { %v1697_v36 = vmax.f32 %v1597_v32, 0.0 }
 0x3b6   :  { %v1725_v37 = vpack.c.bf16 %v1699_v34, %v1698_v33 }
 0x3b7   :  { %v1724_v38 = vpack.c.bf16 %v1697_v36, %v1696_v35 }
 0x3b9   :  { %2957 = vmatprep.mubr.msk.bf16.mxu1 %vm1769_vm0, %v1724_v38 }
 0x3ba   :  { %2958 = vmatmul.mubr.msk.bf16.gmra.mrb[104].mxu1 %vm1769_vm0, %v1725_v37 }
 0x3bf   :  { %v2923_v39 = vpop.f32.mrb[76].mxu1 }
 0x3c0   :  { %v1618_v40 = vadd.f32 %v2923_v39, %v3550_v60  ;;  %v1609_v41 = vpop.f32.mrb[77].mxu1 }
 0x3c1   :  { %v1610_v42 = vadd.f32 %v1609_v41, %v3550_v60  ;;  %v2924_v43 = vpop.f32.mrb[78].mxu1 }
 0x3c2   :  { %v1621_v44 = vadd.f32 %v2924_v43, %v3550_v60  ;;  %v1612_v45 = vpop.f32.mrb[79].mxu1  ;;  %v1702_v47 = vmax.f32 %v1618_v40, 0.0 }
 0x3c3   :  { %v1613_v46 = vadd.f32 %v1612_v45, %v3550_v60  ;;  %v1700_v49 = vmax.f32 %v1610_v42, 0.0 }
 0x3c4   :  { %v1703_v48 = vmax.f32 %v1621_v44, 0.0 }
 0x3c5   :  { %v1701_v50 = vmax.f32 %v1613_v46, 0.0 }
 0x3c6   :  { %v1727_v51 = vpack.c.bf16 %v1703_v48, %v1702_v47  ;;  %v3314_v48 = vld [vmem:[#allocation4 + $0x3e0] ss:$8 sps:$4 sm:$0xff]  }
 0x3c7   :  { %v1726_v52 = vpack.c.bf16 %v1701_v50, %v1700_v49  ;;  %3017 = vmatprep.subr.bf16.mxu0 %v3314_v48  ;;  %3051 = vmatprep.subr.bf16.mxu1 %v3314_v48  ;;  %v3600_v49 = vld [vmem:[#allocation6 + $0x3] ss:$0 sm:$0xff] }
 0x3c8   :  { %3018 = vmatpush3.bf16.msra.mxu0 %v3314_v48 }
 0x3c9   :  { %2961 = vmatprep.mubr.msk.bf16.mxu1 %vm1769_vm0, %v1726_v52 }
 0x3ca   :  { %2962 = vmatmul.mubr.msk.bf16.gmra.mrb[108].mxu1 %vm1769_vm0, %v1727_v51 }
 0x3cf   :  { %v2927_v53 = vpop.f32.mrb[80].mxu1 }
 0x3d0   :  { %v1634_v54 = vadd.f32 %v2927_v53, %v3550_v60  ;;  %v1625_v55 = vpop.f32.mrb[81].mxu1 }
 0x3d1   :  { %v1626_v56 = vadd.f32 %v1625_v55, %v3550_v60  ;;  %v2928_v57 = vpop.f32.mrb[82].mxu1 }
 0x3d2   :  { %v1637_v58 = vadd.f32 %v2928_v57, %v3550_v60  ;;  %v1628_v59 = vpop.f32.mrb[83].mxu1  ;;  %v1706_v62 = vmax.f32 %v1634_v54, 0.0 }
 0x3d3   :  { %v1629_v61 = vadd.f32 %v1628_v59, %v3550_v60  ;;  %v1704_v0 = vmax.f32 %v1626_v56, 0.0 }
 0x3d4   :  { %v1707_v63 = vmax.f32 %v1637_v58, 0.0 }
 0x3d5   :  { %v1705_v1 = vmax.f32 %v1629_v61, 0.0 }
 0x3d6   :  { %v1729_v2 = vpack.c.bf16 %v1707_v63, %v1706_v62 }
 0x3d7   :  { %v1728_v3 = vpack.c.bf16 %v1705_v1, %v1704_v0 }
 0x3d9   :  { %2965 = vmatprep.mubr.msk.bf16.mxu1 %vm1769_vm0, %v1728_v3 }
 0x3da   :  { %2966 = vmatmul.mubr.msk.bf16.gmra.mrb[112].mxu1 %vm1769_vm0, %v1729_v2 }
 0x3df   :  { %v2931_v4 = vpop.f32.mrb[84].mxu1 }
 0x3e0   :  { %v1650_v5 = vadd.f32 %v2931_v4, %v3550_v60  ;;  %v1641_v6 = vpop.f32.mrb[85].mxu1 }
 0x3e1   :  { %v1642_v7 = vadd.f32 %v1641_v6, %v3550_v60  ;;  %v2932_v8 = vpop.f32.mrb[86].mxu1 }
 0x3e2   :  { %v1653_v9 = vadd.f32 %v2932_v8, %v3550_v60  ;;  %v1644_v10 = vpop.f32.mrb[87].mxu1  ;;  %v1710_v11 = vmax.f32 %v1650_v5, 0.0 }
 0x3e3   :  { %v1645_v21 = vadd.f32 %v1644_v10, %v3550_v60  ;;  %v1708_v22 = vmax.f32 %v1642_v7, 0.0 }
 0x3e4   :  { %v1711_v12 = vmax.f32 %v1653_v9, 0.0 }
 0x3e5   :  { %v1709_v13 = vmax.f32 %v1645_v21, 0.0 }
 0x3e6   :  { %v1731_v14 = vpack.c.bf16 %v1711_v12, %v1710_v11 }
 0x3e7   :  { %v1730_v15 = vpack.c.bf16 %v1709_v13, %v1708_v22 }
 0x3e9   :  { %2969 = vmatprep.mubr.msk.bf16.mxu1 %vm1769_vm0, %v1730_v15 }
 0x3ea   :  { %2970 = vmatmul.mubr.msk.bf16.gmra.mrb[116].mxu1 %vm1769_vm0, %v1731_v14 }
 0x3ef   :  { %v2935_v17 = vpop.f32.mrb[88].mxu1 }
 0x3f0   :  { %v1666_v18 = vadd.f32 %v2935_v17, %v3550_v60  ;;  %v1657_v19 = vpop.f32.mrb[89].mxu1 }
 0x3f1   :  { %v1658_v20 = vadd.f32 %v1657_v19, %v3550_v60  ;;  %v2936_v23 = vpop.f32.mrb[90].mxu1 }
 0x3f2   :  { %v1669_v24 = vadd.f32 %v2936_v23, %v3550_v60  ;;  %v1660_v25 = vpop.f32.mrb[91].mxu1  ;;  %v1714_v28 = vmax.f32 %v1666_v18, 0.0 }
 0x3f3   :  { %v1661_v27 = vadd.f32 %v1660_v25, %v3550_v60  ;;  %v1712_v30 = vmax.f32 %v1658_v20, 0.0 }
 0x3f4   :  { %v1715_v29 = vmax.f32 %v1669_v24, 0.0 }
 0x3f5   :  { %v1713_v31 = vmax.f32 %v1661_v27, 0.0 }
 0x3f6   :  { %v1733_v32 = vpack.c.bf16 %v1715_v29, %v1714_v28 }
 0x3f7   :  { %v1732_v33 = vpack.c.bf16 %v1713_v31, %v1712_v30 }
 0x3f9   :  { %2973 = vmatprep.mubr.msk.bf16.mxu1 %vm1769_vm0, %v1732_v33 }
 0x3fa   :  { %2974 = vmatmul.mubr.msk.bf16.gmra.mrb[120].mxu1 %vm1769_vm0, %v1733_v32 }
 0x3ff   :  { %v2939_v34 = vpop.f32.mrb[92].mxu1 }
 0x400   :  { %v1682_v35 = vadd.f32 %v2939_v34, %v3550_v60  ;;  %v1673_v36 = vpop.f32.mrb[93].mxu1 }
 0x401   :  { %v1674_v37 = vadd.f32 %v1673_v36, %v3550_v60  ;;  %v2940_v38 = vpop.f32.mrb[94].mxu1 }
 0x402   :  { %v1685_v39 = vadd.f32 %v2940_v38, %v3550_v60  ;;  %v1676_v40 = vpop.f32.mrb[95].mxu1  ;;  %v1718_v42 = vmax.f32 %v1682_v35, 0.0 }
 0x403   :  { %v1677_v41 = vadd.f32 %v1676_v40, %v3550_v60  ;;  %v1716_v44 = vmax.f32 %v1674_v37, 0.0 }
 0x404   :  { %v1719_v43 = vmax.f32 %v1685_v39, 0.0 }
 0x405   :  { %v1717_v45 = vmax.f32 %v1677_v41, 0.0 }
 0x406   :  { %v1735_v46 = vpack.c.bf16 %v1719_v43, %v1718_v42 }
 0x407   :  { %v1734_v47 = vpack.c.bf16 %v1717_v45, %v1716_v44 }
 0x409   :  { %2977 = vmatprep.mubr.msk.bf16.mxu1 %vm1769_vm0, %v1734_v47 }
 0x40a   :  { %2978 = vmatmul.mubr.msk.bf16.gmra.mrb[124].mxu1 %vm1769_vm0, %v1735_v46 }
 0x46d   :  { %v2951_v50 = vpop.f32.mrb[96].mxu1 }
 0x46e   :  { %v1861_v51 = vadd.f32 %v2951_v50, %v3600_v49  ;;  %v1852_v60 = vpop.f32.mrb[97].mxu1 }
 0x46f   :  { %v1853_v52 = vadd.f32 %v1852_v60, %v3600_v49  ;;  %v2952_v53 = vpop.f32.mrb[98].mxu1 }
 0x470   :  { %v1864_v54 = vadd.f32 %v2952_v53, %v3600_v49  ;;  %v1855_v55 = vpop.f32.mrb[99].mxu1  ;;  %v1981_v57 = vmax.f32 %v1861_v51, 0.0 }
 0x471   :  { %v1856_v56 = vadd.f32 %v1855_v55, %v3600_v49  ;;  %v1979_v59 = vmax.f32 %v1853_v52, 0.0 }
 0x472   :  { %v1982_v58 = vmax.f32 %v1864_v54, 0.0 }
 0x473   :  { %v1980_v61 = vmax.f32 %v1856_v56, 0.0 }
 0x474   :  { %v2012_v62 = vpack.c.bf16 %v1982_v58, %v1981_v57 }
 0x475   :  { %v2011_v63 = vpack.c.bf16 %v1980_v61, %v1979_v59 }
 0x477   :  { %2985 = vmatprep.mubr.msk.bf16.mxu1 %vm2044_vm1, %v2011_v63 }
 0x478   :  { %2986 = vmatmul.mubr.msk.bf16.vlgmr.msra.gmra.mrb[128].mxu1 %vm2044_vm1, %v2012_v62 }
 0x479   :  { %3052 = vmatpush3.bf16.msra.mxu1 %v3314_v48 }
 0x47d   :  { %v2955_v0 = vpop.f32.mrb[100].mxu1 }
 0x47e   :  { %v1877_v1 = vadd.f32 %v2955_v0, %v3600_v49  ;;  %v1868_v2 = vpop.f32.mrb[101].mxu1 }
 0x47f   :  { %v1869_v3 = vadd.f32 %v1868_v2, %v3600_v49  ;;  %v2956_v4 = vpop.f32.mrb[102].mxu1 }
 0x480   :  { %v1880_v5 = vadd.f32 %v2956_v4, %v3600_v49  ;;  %v1871_v6 = vpop.f32.mrb[103].mxu1  ;;  %v1985_v8 = vmax.f32 %v1877_v1, 0.0 }
 0x481   :  { %v1872_v7 = vadd.f32 %v1871_v6, %v3600_v49  ;;  %v1983_v10 = vmax.f32 %v1869_v3, 0.0 }
 0x482   :  { %v1986_v9 = vmax.f32 %v1880_v5, 0.0 }
 0x483   :  { %v1984_v21 = vmax.f32 %v1872_v7, 0.0 }
 0x484   :  { %v2014_v11 = vpack.c.bf16 %v1986_v9, %v1985_v8 }
 0x485   :  { %v2013_v12 = vpack.c.bf16 %v1984_v21, %v1983_v10 }
 0x487   :  { %2989 = vmatprep.mubr.msk.bf16.mxu1 %vm2044_vm1, %v2013_v12 }
 0x488   :  { %2990 = vmatmul.mubr.msk.bf16.gmra.mrb[132].mxu1 %vm2044_vm1, %v2014_v11 }
 0x48d   :  { %v2959_v22 = vpop.f32.mrb[104].mxu1 }
 0x48e   :  { %v1893_v13 = vadd.f32 %v2959_v22, %v3600_v49  ;;  %v1884_v14 = vpop.f32.mrb[105].mxu1 }
 0x48f   :  { %v1885_v15 = vadd.f32 %v1884_v14, %v3600_v49  ;;  %v2960_v16 = vpop.f32.mrb[106].mxu1 }
 0x490   :  { %v1896_v17 = vadd.f32 %v2960_v16, %v3600_v49  ;;  %v1887_v18 = vpop.f32.mrb[107].mxu1  ;;  %v1989_v20 = vmax.f32 %v1893_v13, 0.0 }
 0x491   :  { %v1888_v19 = vadd.f32 %v1887_v18, %v3600_v49  ;;  %v1987_v24 = vmax.f32 %v1885_v15, 0.0 }
 0x492   :  { %v1990_v23 = vmax.f32 %v1896_v17, 0.0 }
 0x493   :  { %v1988_v25 = vmax.f32 %v1888_v19, 0.0 }
 0x494   :  { %v2016_v26 = vpack.c.bf16 %v1990_v23, %v1989_v20 }
 0x495   :  { %v2015_v27 = vpack.c.bf16 %v1988_v25, %v1987_v24 }
 0x497   :  { %2993 = vmatprep.mubr.msk.bf16.mxu1 %vm2044_vm1, %v2015_v27 }
 0x498   :  { %2994 = vmatmul.mubr.msk.bf16.gmra.mrb[136].mxu1 %vm2044_vm1, %v2016_v26 }
 0x49d   :  { %v2963_v28 = vpop.f32.mrb[108].mxu1 }
 0x49e   :  { %v1909_v29 = vadd.f32 %v2963_v28, %v3600_v49  ;;  %v1900_v30 = vpop.f32.mrb[109].mxu1 }
 0x49f   :  { %v1901_v31 = vadd.f32 %v1900_v30, %v3600_v49  ;;  %v2964_v32 = vpop.f32.mrb[110].mxu1 }
 0x4a0   :  { %v1912_v33 = vadd.f32 %v2964_v32, %v3600_v49  ;;  %v1903_v34 = vpop.f32.mrb[111].mxu1  ;;  %v1993_v36 = vmax.f32 %v1909_v29, 0.0 }
 0x4a1   :  { %v1904_v35 = vadd.f32 %v1903_v34, %v3600_v49  ;;  %v1991_v38 = vmax.f32 %v1901_v31, 0.0 }
 0x4a2   :  { %v1994_v37 = vmax.f32 %v1912_v33, 0.0 }
 0x4a3   :  { %v1992_v39 = vmax.f32 %v1904_v35, 0.0  ;;  %v3650_v35 = vld [vmem:[#allocation6 + $0x4] ss:$0 sm:$0xff] }
 0x4a4   :  { %v2018_v40 = vpack.c.bf16 %v1994_v37, %v1993_v36 }
 0x4a5   :  { %v2017_v41 = vpack.c.bf16 %v1992_v39, %v1991_v38 }
 0x4a7   :  { %2997 = vmatprep.mubr.msk.bf16.mxu1 %vm2044_vm1, %v2017_v41 }
 0x4a8   :  { %2998 = vmatmul.mubr.msk.bf16.gmra.mrb[140].mxu1 %vm2044_vm1, %v2018_v40 }
 0x4ad   :  { %v2967_v42 = vpop.f32.mrb[112].mxu1 }
 0x4ae   :  { %v1925_v43 = vadd.f32 %v2967_v42, %v3600_v49  ;;  %v1916_v44 = vpop.f32.mrb[113].mxu1 }
 0x4af   :  { %v1917_v45 = vadd.f32 %v1916_v44, %v3600_v49  ;;  %v2968_v46 = vpop.f32.mrb[114].mxu1 }
 0x4b0   :  { %v1928_v47 = vadd.f32 %v2968_v46, %v3600_v49  ;;  %v1919_v48 = vpop.f32.mrb[115].mxu1  ;;  %v1997_v51 = vmax.f32 %v1925_v43, 0.0 }
 0x4b1   :  { %v1920_v50 = vadd.f32 %v1919_v48, %v3600_v49  ;;  %v1995_v52 = vmax.f32 %v1917_v45, 0.0 }
 0x4b2   :  { %v1998_v60 = vmax.f32 %v1928_v47, 0.0 }
 0x4b3   :  { %v1996_v53 = vmax.f32 %v1920_v50, 0.0 }
 0x4b4   :  { %v2020_v54 = vpack.c.bf16 %v1998_v60, %v1997_v51 }
 0x4b5   :  { %v2019_v55 = vpack.c.bf16 %v1996_v53, %v1995_v52 }
 0x4b7   :  { %3001 = vmatprep.mubr.msk.bf16.mxu1 %vm2044_vm1, %v2019_v55 }
 0x4b8   :  { %3002 = vmatmul.mubr.msk.bf16.gmra.mrb[144].mxu1 %vm2044_vm1, %v2020_v54 }
 0x4bd   :  { %v2971_v56 = vpop.f32.mrb[116].mxu1 }
 0x4be   :  { %v1941_v57 = vadd.f32 %v2971_v56, %v3600_v49  ;;  %v1932_v58 = vpop.f32.mrb[117].mxu1 }
 0x4bf   :  { %v1933_v59 = vadd.f32 %v1932_v58, %v3600_v49  ;;  %v2972_v61 = vpop.f32.mrb[118].mxu1 }
 0x4c0   :  { %v1944_v62 = vadd.f32 %v2972_v61, %v3600_v49  ;;  %v1935_v63 = vpop.f32.mrb[119].mxu1  ;;  %v2001_v1 = vmax.f32 %v1941_v57, 0.0 }
 0x4c1   :  { %v1936_v0 = vadd.f32 %v1935_v63, %v3600_v49  ;;  %v1999_v3 = vmax.f32 %v1933_v59, 0.0 }
 0x4c2   :  { %v2002_v2 = vmax.f32 %v1944_v62, 0.0 }
 0x4c3   :  { %v2000_v4 = vmax.f32 %v1936_v0, 0.0 }
 0x4c4   :  { %v2022_v5 = vpack.c.bf16 %v2002_v2, %v2001_v1 }
 0x4c5   :  { %v2021_v6 = vpack.c.bf16 %v2000_v4, %v1999_v3 }
 0x4c7   :  { %3005 = vmatprep.mubr.msk.bf16.mxu1 %vm2044_vm1, %v2021_v6 }
 0x4c8   :  { %3006 = vmatmul.mubr.msk.bf16.gmra.mrb[148].mxu1 %vm2044_vm1, %v2022_v5 }
 0x4cd   :  { %v2975_v7 = vpop.f32.mrb[120].mxu1 }
 0x4ce   :  { %v1957_v8 = vadd.f32 %v2975_v7, %v3600_v49  ;;  %v1948_v9 = vpop.f32.mrb[121].mxu1 }
 0x4cf   :  { %v1949_v10 = vadd.f32 %v1948_v9, %v3600_v49  ;;  %v2976_v21 = vpop.f32.mrb[122].mxu1 }
 0x4d0   :  { %v1960_v11 = vadd.f32 %v2976_v21, %v3600_v49  ;;  %v1951_v12 = vpop.f32.mrb[123].mxu1  ;;  %v2005_v13 = vmax.f32 %v1957_v8, 0.0 }
 0x4d1   :  { %v1952_v22 = vadd.f32 %v1951_v12, %v3600_v49  ;;  %v2003_v15 = vmax.f32 %v1949_v10, 0.0 }
 0x4d2   :  { %v2006_v14 = vmax.f32 %v1960_v11, 0.0 }
 0x4d3   :  { %v2004_v16 = vmax.f32 %v1952_v22, 0.0 }
 0x4d4   :  { %v2024_v17 = vpack.c.bf16 %v2006_v14, %v2005_v13 }
 0x4d5   :  { %v2023_v18 = vpack.c.bf16 %v2004_v16, %v2003_v15 }
 0x4d7   :  { %3009 = vmatprep.mubr.msk.bf16.mxu1 %vm2044_vm1, %v2023_v18 }
 0x4d8   :  { %3010 = vmatmul.mubr.msk.bf16.gmra.mrb[152].mxu1 %vm2044_vm1, %v2024_v17 }
 0x4dd   :  { %v2979_v19 = vpop.f32.mrb[124].mxu1 }
 0x4de   :  { %v1973_v20 = vadd.f32 %v2979_v19, %v3600_v49  ;;  %v1964_v23 = vpop.f32.mrb[125].mxu1 }
 0x4df   :  { %v1965_v24 = vadd.f32 %v1964_v23, %v3600_v49  ;;  %v2980_v25 = vpop.f32.mrb[126].mxu1 }
 0x4e0   :  { %v1976_v26 = vadd.f32 %v2980_v25, %v3600_v49  ;;  %v1967_v27 = vpop.f32.mrb[127].mxu1  ;;  %v2009_v29 = vmax.f32 %v1973_v20, 0.0 }
 0x4e1   :  { %v1968_v28 = vadd.f32 %v1967_v27, %v3600_v49  ;;  %v2007_v31 = vmax.f32 %v1965_v24, 0.0 }
 0x4e2   :  { %v2010_v30 = vmax.f32 %v1976_v26, 0.0 }
 0x4e3   :  { %v2008_v32 = vmax.f32 %v1968_v28, 0.0 }
 0x4e4   :  { %v2026_v33 = vpack.c.bf16 %v2010_v30, %v2009_v29 }
 0x4e5   :  { %v2025_v34 = vpack.c.bf16 %v2008_v32, %v2007_v31 }
 0x4e7   :  { %3013 = vmatprep.mubr.msk.bf16.mxu1 %vm2044_vm1, %v2025_v34 }
 0x4e8   :  { %3014 = vmatmul.mubr.msk.bf16.gmra.mrb[156].mxu1 %vm2044_vm1, %v2026_v33 }
 0x54b   :  { %v2987_v36 = vpop.f32.mrb[128].mxu1 }
 0x54c   :  { %v2136_v37 = vadd.f32 %v2987_v36, %v3650_v35  ;;  %v2127_v38 = vpop.f32.mrb[129].mxu1 }
 0x54d   :  { %v2128_v39 = vadd.f32 %v2127_v38, %v3650_v35  ;;  %v2988_v40 = vpop.f32.mrb[130].mxu1 }
 0x54e   :  { %v2139_v49 = vadd.f32 %v2988_v40, %v3650_v35  ;;  %v2130_v41 = vpop.f32.mrb[131].mxu1  ;;  %v2256_v43 = vmax.f32 %v2136_v37, 0.0 }
 0x54f   :  { %v2131_v42 = vadd.f32 %v2130_v41, %v3650_v35  ;;  %v2254_v45 = vmax.f32 %v2128_v39, 0.0 }
 0x550   :  { %v2257_v44 = vmax.f32 %v2139_v49, 0.0 }
 0x551   :  { %v2255_v46 = vmax.f32 %v2131_v42, 0.0 }
 0x552   :  { %v2287_v47 = vpack.c.bf16 %v2257_v44, %v2256_v43 }
 0x553   :  { %v2286_v48 = vpack.c.bf16 %v2255_v46, %v2254_v45 }
 0x555   :  { %3019 = vmatprep.mubr.msk.bf16.mxu0 %vm2311_vm2, %v2286_v48 }
 0x556   :  { %3020 = vmatmul.mubr.msk.bf16.vlgmr.msra.gmra.mrb[64].mxu0 %vm2311_vm2, %v2287_v47 }
 0x55b   :  { %v2991_v50 = vpop.f32.mrb[132].mxu1 }
 0x55c   :  { %v2152_v51 = vadd.f32 %v2991_v50, %v3650_v35  ;;  %v2143_v60 = vpop.f32.mrb[133].mxu1 }
 0x55d   :  { %v2144_v52 = vadd.f32 %v2143_v60, %v3650_v35  ;;  %v2992_v53 = vpop.f32.mrb[134].mxu1 }
 0x55e   :  { %v2155_v54 = vadd.f32 %v2992_v53, %v3650_v35  ;;  %v2146_v55 = vpop.f32.mrb[135].mxu1  ;;  %v2260_v57 = vmax.f32 %v2152_v51, 0.0 }
 0x55f   :  { %v2147_v56 = vadd.f32 %v2146_v55, %v3650_v35  ;;  %v2258_v59 = vmax.f32 %v2144_v52, 0.0 }
 0x560   :  { %v2261_v58 = vmax.f32 %v2155_v54, 0.0 }
 0x561   :  { %v2259_v61 = vmax.f32 %v2147_v56, 0.0 }
 0x562   :  { %v2289_v62 = vpack.c.bf16 %v2261_v58, %v2260_v57 }
 0x563   :  { %v2288_v63 = vpack.c.bf16 %v2259_v61, %v2258_v59 }
 0x565   :  { %3023 = vmatprep.mubr.msk.bf16.mxu0 %vm2311_vm2, %v2288_v63 }
 0x566   :  { %3024 = vmatmul.mubr.msk.bf16.gmra.mrb[68].mxu0 %vm2311_vm2, %v2289_v62 }
 0x56b   :  { %v2995_v0 = vpop.f32.mrb[136].mxu1 }
 0x56c   :  { %v2168_v1 = vadd.f32 %v2995_v0, %v3650_v35  ;;  %v2159_v2 = vpop.f32.mrb[137].mxu1 }
 0x56d   :  { %v2160_v3 = vadd.f32 %v2159_v2, %v3650_v35  ;;  %v2996_v4 = vpop.f32.mrb[138].mxu1 }
 0x56e   :  { %v2171_v5 = vadd.f32 %v2996_v4, %v3650_v35  ;;  %v2162_v6 = vpop.f32.mrb[139].mxu1  ;;  %v2264_v8 = vmax.f32 %v2168_v1, 0.0 }
 0x56f   :  { %v2163_v7 = vadd.f32 %v2162_v6, %v3650_v35  ;;  %v2262_v10 = vmax.f32 %v2160_v3, 0.0 }
 0x570   :  { %v2265_v9 = vmax.f32 %v2171_v5, 0.0 }
 0x571   :  { %v2263_v21 = vmax.f32 %v2163_v7, 0.0 }
 0x572   :  { %v2291_v11 = vpack.c.bf16 %v2265_v9, %v2264_v8 }
 0x573   :  { %v2290_v12 = vpack.c.bf16 %v2263_v21, %v2262_v10 }
 0x575   :  { %3027 = vmatprep.mubr.msk.bf16.mxu0 %vm2311_vm2, %v2290_v12 }
 0x576   :  { %3028 = vmatmul.mubr.msk.bf16.gmra.mrb[72].mxu0 %vm2311_vm2, %v2291_v11 }
 0x57b   :  { %v2999_v22 = vpop.f32.mrb[140].mxu1 }
 0x57c   :  { %v2184_v13 = vadd.f32 %v2999_v22, %v3650_v35  ;;  %v2175_v14 = vpop.f32.mrb[141].mxu1 }
 0x57d   :  { %v2176_v15 = vadd.f32 %v2175_v14, %v3650_v35  ;;  %v3000_v16 = vpop.f32.mrb[142].mxu1 }
 0x57e   :  { %v2187_v17 = vadd.f32 %v3000_v16, %v3650_v35  ;;  %v2178_v18 = vpop.f32.mrb[143].mxu1  ;;  %v2268_v20 = vmax.f32 %v2184_v13, 0.0 }
 0x57f   :  { %v2179_v19 = vadd.f32 %v2178_v18, %v3650_v35  ;;  %v2266_v24 = vmax.f32 %v2176_v15, 0.0 }
 0x580   :  { %v2269_v23 = vmax.f32 %v2187_v17, 0.0 }
 0x581   :  { %v2267_v25 = vmax.f32 %v2179_v19, 0.0  ;;  %v3700_v19 = vld [vmem:[#allocation6 + $0x5] ss:$0 sm:$0xff] }
 0x582   :  { %v2293_v26 = vpack.c.bf16 %v2269_v23, %v2268_v20 }
 0x583   :  { %v2292_v27 = vpack.c.bf16 %v2267_v25, %v2266_v24 }
 0x585   :  { %3031 = vmatprep.mubr.msk.bf16.mxu0 %vm2311_vm2, %v2292_v27 }
 0x586   :  { %3032 = vmatmul.mubr.msk.bf16.gmra.mrb[76].mxu0 %vm2311_vm2, %v2293_v26 }
 0x58b   :  { %v3003_v28 = vpop.f32.mrb[144].mxu1 }
 0x58c   :  { %v2200_v29 = vadd.f32 %v3003_v28, %v3650_v35  ;;  %v2191_v30 = vpop.f32.mrb[145].mxu1 }
 0x58d   :  { %v2192_v31 = vadd.f32 %v2191_v30, %v3650_v35  ;;  %v3004_v32 = vpop.f32.mrb[146].mxu1 }
 0x58e   :  { %v2203_v33 = vadd.f32 %v3004_v32, %v3650_v35  ;;  %v2194_v34 = vpop.f32.mrb[147].mxu1  ;;  %v2272_v37 = vmax.f32 %v2200_v29, 0.0 }
 0x58f   :  { %v2195_v36 = vadd.f32 %v2194_v34, %v3650_v35  ;;  %v2270_v39 = vmax.f32 %v2192_v31, 0.0 }
 0x590   :  { %v2273_v38 = vmax.f32 %v2203_v33, 0.0 }
 0x591   :  { %v2271_v40 = vmax.f32 %v2195_v36, 0.0 }
 0x592   :  { %v2295_v49 = vpack.c.bf16 %v2273_v38, %v2272_v37 }
 0x593   :  { %v2294_v41 = vpack.c.bf16 %v2271_v40, %v2270_v39 }
 0x595   :  { %3035 = vmatprep.mubr.msk.bf16.mxu0 %vm2311_vm2, %v2294_v41 }
 0x596   :  { %3036 = vmatmul.mubr.msk.bf16.gmra.mrb[80].mxu0 %vm2311_vm2, %v2295_v49 }
 0x59b   :  { %v3007_v42 = vpop.f32.mrb[148].mxu1 }
 0x59c   :  { %v2216_v43 = vadd.f32 %v3007_v42, %v3650_v35  ;;  %v2207_v44 = vpop.f32.mrb[149].mxu1 }
 0x59d   :  { %v2208_v45 = vadd.f32 %v2207_v44, %v3650_v35  ;;  %v3008_v46 = vpop.f32.mrb[150].mxu1 }
 0x59e   :  { %v2219_v47 = vadd.f32 %v3008_v46, %v3650_v35  ;;  %v2210_v48 = vpop.f32.mrb[151].mxu1  ;;  %v2276_v51 = vmax.f32 %v2216_v43, 0.0 }
 0x59f   :  { %v2211_v50 = vadd.f32 %v2210_v48, %v3650_v35  ;;  %v2274_v52 = vmax.f32 %v2208_v45, 0.0 }
 0x5a0   :  { %v2277_v60 = vmax.f32 %v2219_v47, 0.0 }
 0x5a1   :  { %v2275_v53 = vmax.f32 %v2211_v50, 0.0 }
 0x5a2   :  { %v2297_v54 = vpack.c.bf16 %v2277_v60, %v2276_v51 }
 0x5a3   :  { %v2296_v55 = vpack.c.bf16 %v2275_v53, %v2274_v52 }
 0x5a5   :  { %3039 = vmatprep.mubr.msk.bf16.mxu0 %vm2311_vm2, %v2296_v55 }
 0x5a6   :  { %3040 = vmatmul.mubr.msk.bf16.gmra.mrb[84].mxu0 %vm2311_vm2, %v2297_v54 }
 0x5ab   :  { %v3011_v56 = vpop.f32.mrb[152].mxu1 }
 0x5ac   :  { %v2232_v57 = vadd.f32 %v3011_v56, %v3650_v35  ;;  %v2223_v58 = vpop.f32.mrb[153].mxu1 }
 0x5ad   :  { %v2224_v59 = vadd.f32 %v2223_v58, %v3650_v35  ;;  %v3012_v61 = vpop.f32.mrb[154].mxu1 }
 0x5ae   :  { %v2235_v62 = vadd.f32 %v3012_v61, %v3650_v35  ;;  %v2226_v63 = vpop.f32.mrb[155].mxu1  ;;  %v2280_v1 = vmax.f32 %v2232_v57, 0.0 }
 0x5af   :  { %v2227_v0 = vadd.f32 %v2226_v63, %v3650_v35  ;;  %v2278_v3 = vmax.f32 %v2224_v59, 0.0 }
 0x5b0   :  { %v2281_v2 = vmax.f32 %v2235_v62, 0.0 }
 0x5b1   :  { %v2279_v4 = vmax.f32 %v2227_v0, 0.0 }
 0x5b2   :  { %v2299_v5 = vpack.c.bf16 %v2281_v2, %v2280_v1 }
 0x5b3   :  { %v2298_v6 = vpack.c.bf16 %v2279_v4, %v2278_v3 }
 0x5b5   :  { %3043 = vmatprep.mubr.msk.bf16.mxu1 %vm2311_vm2, %v2298_v6 }
 0x5b6   :  { %3044 = vmatmul.mubr.msk.bf16.vlgmr.msra.gmra.mrb[160].mxu1 %vm2311_vm2, %v2299_v5 }
 0x5bb   :  { %v3015_v7 = vpop.f32.mrb[156].mxu1 }
 0x5bc   :  { %v2248_v8 = vadd.f32 %v3015_v7, %v3650_v35  ;;  %v2239_v9 = vpop.f32.mrb[157].mxu1 }
 0x5bd   :  { %v2240_v10 = vadd.f32 %v2239_v9, %v3650_v35  ;;  %v3016_v21 = vpop.f32.mrb[158].mxu1 }
 0x5be   :  { %v2251_v11 = vadd.f32 %v3016_v21, %v3650_v35  ;;  %v2242_v12 = vpop.f32.mrb[159].mxu1  ;;  %v2284_v13 = vmax.f32 %v2248_v8, 0.0 }
 0x5bf   :  { %v2243_v22 = vadd.f32 %v2242_v12, %v3650_v35  ;;  %v2282_v15 = vmax.f32 %v2240_v10, 0.0 }
 0x5c0   :  { %v2285_v14 = vmax.f32 %v2251_v11, 0.0 }
 0x5c1   :  { %v2283_v16 = vmax.f32 %v2243_v22, 0.0 }
 0x5c2   :  { %v2301_v17 = vpack.c.bf16 %v2285_v14, %v2284_v13 }
 0x5c3   :  { %v2300_v18 = vpack.c.bf16 %v2283_v16, %v2282_v15 }
 0x5c5   :  { %3047 = vmatprep.mubr.msk.bf16.mxu1 %vm2311_vm2, %v2300_v18 }
 0x5c6   :  { %3048 = vmatmul.mubr.msk.bf16.gmra.mrb[164].mxu1 %vm2311_vm2, %v2301_v17 }
 0x629   :  { %v3021_v20 = vpop.f32.mrb[64].mxu0 }
 0x62a   :  { %v2403_v23 = vadd.f32 %v3021_v20, %v3700_v19  ;;  %v2394_v24 = vpop.f32.mrb[65].mxu0 }
 0x62b   :  { %v2395_v25 = vadd.f32 %v2394_v24, %v3700_v19  ;;  %v3022_v26 = vpop.f32.mrb[66].mxu0 }
 0x62c   :  { %2523 = vst [vmem:[%s3833_s3 + $0x10] sm:$0xff] %v2403_v23  ;;  %v2406_v35 = vadd.f32 %v3022_v26, %v3700_v19  ;;  %v2397_v27 = vpop.f32.mrb[67].mxu0 }
 0x62d   :  { %2521 = vst [vmem:[%s3833_s3] sm:$0xff] %v2395_v25  ;;  %v2398_v28 = vadd.f32 %v2397_v27, %v3700_v19 }
 0x62e   :  { %2524 = vst [vmem:[%s3833_s3 + $0x18] sm:$0xff] %v2406_v35 }
 0x62f   :  { %2522 = vst [vmem:[%s3833_s3 + $0x8] sm:$0xff] %v2398_v28 }
 0x639   :  { %v3025_v29 = vpop.f32.mrb[68].mxu0 }
 0x63a   :  { %v2419_v30 = vadd.f32 %v3025_v29, %v3700_v19  ;;  %v2410_v31 = vpop.f32.mrb[69].mxu0 }
 0x63b   :  { %v2411_v32 = vadd.f32 %v2410_v31, %v3700_v19  ;;  %v3026_v33 = vpop.f32.mrb[70].mxu0 }
 0x63c   :  { %2527 = vst [vmem:[%s3833_s3 + $0x30] sm:$0xff] %v2419_v30  ;;  %v2422_v34 = vadd.f32 %v3026_v33, %v3700_v19  ;;  %v2413_v36 = vpop.f32.mrb[71].mxu0 }
 0x63d   :  { %2525 = vst [vmem:[%s3833_s3 + $0x20] sm:$0xff] %v2411_v32  ;;  %v2414_v37 = vadd.f32 %v2413_v36, %v3700_v19 }
 0x63e   :  { %2528 = vst [vmem:[%s3833_s3 + $0x38] sm:$0xff] %v2422_v34 }
 0x63f   :  { %2526 = vst [vmem:[%s3833_s3 + $0x28] sm:$0xff] %v2414_v37 }
 0x649   :  { %v3029_v38 = vpop.f32.mrb[72].mxu0 }
 0x64a   :  { %v2435_v39 = vadd.f32 %v3029_v38, %v3700_v19  ;;  %v2426_v40 = vpop.f32.mrb[73].mxu0 }
 0x64b   :  { %v2427_v49 = vadd.f32 %v2426_v40, %v3700_v19  ;;  %v3030_v41 = vpop.f32.mrb[74].mxu0 }
 0x64c   :  { %2531 = vst [vmem:[%s3833_s3 + $0x50] sm:$0xff] %v2435_v39  ;;  %v2438_v42 = vadd.f32 %v3030_v41, %v3700_v19  ;;  %v2429_v43 = vpop.f32.mrb[75].mxu0 }
 0x64d   :  { %2529 = vst [vmem:[%s3833_s3 + $0x40] sm:$0xff] %v2427_v49  ;;  %v2430_v44 = vadd.f32 %v2429_v43, %v3700_v19 }
 0x64e   :  { %2532 = vst [vmem:[%s3833_s3 + $0x58] sm:$0xff] %v2438_v42 }
 0x64f   :  { %2530 = vst [vmem:[%s3833_s3 + $0x48] sm:$0xff] %v2430_v44 }
 0x659   :  { %v3033_v45 = vpop.f32.mrb[76].mxu0 }
 0x65a   :  { %v2451_v46 = vadd.f32 %v3033_v45, %v3700_v19  ;;  %v2442_v47 = vpop.f32.mrb[77].mxu0 }
 0x65b   :  { %v2443_v48 = vadd.f32 %v2442_v47, %v3700_v19  ;;  %v3034_v50 = vpop.f32.mrb[78].mxu0 }
 0x65c   :  { %2535 = vst [vmem:[%s3833_s3 + $0x70] sm:$0xff] %v2451_v46  ;;  %v2454_v51 = vadd.f32 %v3034_v50, %v3700_v19  ;;  %v2445_v60 = vpop.f32.mrb[79].mxu0 }
 0x65d   :  { %2533 = vst [vmem:[%s3833_s3 + $0x60] sm:$0xff] %v2443_v48  ;;  %v2446_v52 = vadd.f32 %v2445_v60, %v3700_v19 }
 0x65e   :  { %2536 = vst [vmem:[%s3833_s3 + $0x78] sm:$0xff] %v2454_v51 }
 0x65f   :  { %2534 = vst [vmem:[%s3833_s3 + $0x68] sm:$0xff] %v2446_v52 }
 0x669   :  { %v3037_v53 = vpop.f32.mrb[80].mxu0 }
 0x66a   :  { %v2467_v54 = vadd.f32 %v3037_v53, %v3700_v19  ;;  %v2458_v55 = vpop.f32.mrb[81].mxu0 }
 0x66b   :  { %v2459_v56 = vadd.f32 %v2458_v55, %v3700_v19  ;;  %v3038_v57 = vpop.f32.mrb[82].mxu0 }
 0x66c   :  { %2539 = vst [vmem:[%s3833_s3 + $0x90] sm:$0xff] %v2467_v54  ;;  %v2470_v58 = vadd.f32 %v3038_v57, %v3700_v19  ;;  %v2461_v59 = vpop.f32.mrb[83].mxu0 }
 0x66d   :  { %2537 = vst [vmem:[%s3833_s3 + $0x80] sm:$0xff] %v2459_v56  ;;  %v2462_v61 = vadd.f32 %v2461_v59, %v3700_v19 }
 0x66e   :  { %2540 = vst [vmem:[%s3833_s3 + $0x98] sm:$0xff] %v2470_v58 }
 0x66f   :  { %2538 = vst [vmem:[%s3833_s3 + $0x88] sm:$0xff] %v2462_v61 }
 0x679   :  { %v3041_v62 = vpop.f32.mrb[84].mxu0 }
 0x67a   :  { %v2483_v63 = vadd.f32 %v3041_v62, %v3700_v19  ;;  %v2474_v0 = vpop.f32.mrb[85].mxu0 }
 0x67b   :  { %v2475_v1 = vadd.f32 %v2474_v0, %v3700_v19  ;;  %v3042_v2 = vpop.f32.mrb[86].mxu0 }
 0x67c   :  { %2543 = vst [vmem:[%s3833_s3 + $0xb0] sm:$0xff] %v2483_v63  ;;  %v2486_v3 = vadd.f32 %v3042_v2, %v3700_v19  ;;  %v2477_v4 = vpop.f32.mrb[87].mxu0 }
 0x67d   :  { %2541 = vst [vmem:[%s3833_s3 + $0xa0] sm:$0xff] %v2475_v1  ;;  %v2478_v5 = vadd.f32 %v2477_v4, %v3700_v19 }
 0x67e   :  { %2544 = vst [vmem:[%s3833_s3 + $0xb8] sm:$0xff] %v2486_v3 }
 0x67f   :  { %2542 = vst [vmem:[%s3833_s3 + $0xa8] sm:$0xff] %v2478_v5 }
 0x689   :  { %v3045_v6 = vpop.f32.mrb[160].mxu1 }
 0x68a   :  { %v2499_v7 = vadd.f32 %v3045_v6, %v3700_v19  ;;  %v2490_v8 = vpop.f32.mrb[161].mxu1 }
 0x68b   :  { %v2491_v9 = vadd.f32 %v2490_v8, %v3700_v19  ;;  %v3046_v10 = vpop.f32.mrb[162].mxu1 }
 0x68c   :  { %2547 = vst [vmem:[%s3833_s3 + $0xd0] sm:$0xff] %v2499_v7  ;;  %v2502_v21 = vadd.f32 %v3046_v10, %v3700_v19  ;;  %v2493_v11 = vpop.f32.mrb[163].mxu1 }
 0x68d   :  { %2545 = vst [vmem:[%s3833_s3 + $0xc0] sm:$0xff] %v2491_v9  ;;  %v2494_v12 = vadd.f32 %v2493_v11, %v3700_v19 }
 0x68e   :  { %2548 = vst [vmem:[%s3833_s3 + $0xd8] sm:$0xff] %v2502_v21 }
 0x68f   :  { %2546 = vst [vmem:[%s3833_s3 + $0xc8] sm:$0xff] %v2494_v12 }
 0x699   :  { %v3049_v22 = vpop.f32.mrb[164].mxu1 }
 0x69a   :  { %v2515_v13 = vadd.f32 %v3049_v22, %v3700_v19  ;;  %v2506_v14 = vpop.f32.mrb[165].mxu1 }
 0x69b   :  { %v2507_v15 = vadd.f32 %v2506_v14, %v3700_v19  ;;  %v3050_v16 = vpop.f32.mrb[166].mxu1 }
 0x69c   :  { %2551 = vst [vmem:[%s3833_s3 + $0xf0] sm:$0xff] %v2515_v13  ;;  %v2518_v17 = vadd.f32 %v3050_v16, %v3700_v19  ;;  %v2509_v18 = vpop.f32.mrb[167].mxu1 }
 0x69d   :  { %2549 = vst [vmem:[%s3833_s3 + $0xe0] sm:$0xff] %v2507_v15  ;;  %v2510_v20 = vadd.f32 %v2509_v18, %v3700_v19 }
 0x69e   :  { %2552 = vst [vmem:[%s3833_s3 + $0xf8] sm:$0xff] %v2518_v17 }
 0x69f   :  { %2550 = vst [vmem:[%s3833_s3 + $0xe8] sm:$0xff] %v2510_v20 }
 0x6a0   :  { %2557 = vsyncpa [#allocation3], 1 }
 0x6a1   :  { %2558 = vsyncpa [#allocation5], 1 }

</bundles_post_ra>
